<compile_context>
chip_gen: v6e
topology: v6e:2x2x1
jax: 0.10.0
libtpu: 0.0.40
codegen_flags: <defaults>
</compile_context>

<pallas_src>
import functools

import jax
import jax.numpy as jnp
from jax.experimental import pallas as pl
from jax.experimental.pallas import tpu as pltpu

_EPS = 1e-5


def _round_up(x, m):
    return -(-x // m) * m


def _vmem_limit_bytes():
    """Per-generation VMEM budget: ~3/4 of physical, capped at 96 MiB."""
    cap = 64 * 1024 * 1024                 # conservative fallback (v7x per-core)
    try:
        info = pltpu.get_tpu_info()
        cap = int(getattr(info, "vmem_capacity_bytes", cap)) or cap
    except Exception:
        pass
    return int(min(cap * 3 // 4, 96 * 1024 * 1024))


# ---------------------------------------------------------------------------
# Pass 1: conv (one MXU matmul, the 9 taps folded into K) + per-channel stats.
# Grid = (2, ni): leading "parallel" axis splits M across TensorCores (v7x),
# trailing "arbitrary" axis is the accumulation axis.  Stats accumulate
# directly into the VMEM-resident (8, Cp) output block owned by each half.
# ---------------------------------------------------------------------------
def _conv_stats_y_kernel(p_ref, w_ref, y_ref, sum_ref, sq_ref):
    i = pl.program_id(1)

    @pl.when(i == 0)
    def _():
        sum_ref[...] = jnp.zeros_like(sum_ref)
        sq_ref[...] = jnp.zeros_like(sq_ref)

    y = jnp.dot(p_ref[...], w_ref[...], preferred_element_type=jnp.float32)
    y_ref[...] = y.astype(y_ref.dtype)                      # bf16 intermediate
    sum_ref[...] += jnp.broadcast_to(jnp.sum(y, axis=0, keepdims=True),
                                     sum_ref.shape)
    sq_ref[...] += jnp.broadcast_to(jnp.sum(y * y, axis=0, keepdims=True),
                                    sq_ref.shape)


def _conv_stats_only_kernel(p_ref, w_ref, sum_ref, sq_ref):
    i = pl.program_id(1)

    @pl.when(i == 0)
    def _():
        sum_ref[...] = jnp.zeros_like(sum_ref)
        sq_ref[...] = jnp.zeros_like(sq_ref)

    y = jnp.dot(p_ref[...], w_ref[...], preferred_element_type=jnp.float32)
    sum_ref[...] += jnp.broadcast_to(jnp.sum(y, axis=0, keepdims=True),
                                     sum_ref.shape)
    sq_ref[...] += jnp.broadcast_to(jnp.sum(y * y, axis=0, keepdims=True),
                                    sq_ref.shape)


def _pass1(patches, wq, tm, ni, store_y, vmem_limit):
    m_pad, kp = patches.shape
    cp = wq.shape[1]
    row_map = lambda c, i: (c * ni + i, 0)
    in_specs = [pl.BlockSpec((tm, kp), row_map),
                pl.BlockSpec((kp, cp), lambda c, i: (0, 0))]
    stat_spec = pl.BlockSpec((8, cp), lambda c, i: (c, 0))
    stat_shape = jax.ShapeDtypeStruct((16, cp), jnp.float32)
    flops = 2 * m_pad * kp * cp
    stats_bytes = 2 * 16 * cp * 4
    if store_y:
        kernel = _conv_stats_y_kernel
        out_shape = (jax.ShapeDtypeStruct((m_pad, cp), jnp.bfloat16),
                     stat_shape, stat_shape)
        out_specs = (pl.BlockSpec((tm, cp), row_map), stat_spec, stat_spec)
        bytes_acc = m_pad * kp * 2 + kp * cp * 2 + m_pad * cp * 2 + stats_bytes
    else:
        kernel = _conv_stats_only_kernel
        out_shape = (stat_shape, stat_shape)
        out_specs = (stat_spec, stat_spec)
        bytes_acc = m_pad * kp * 2 + kp * cp * 2 + stats_bytes
    return pl.pallas_call(
        kernel,
        out_shape=out_shape,
        grid=(2, ni),
        in_specs=in_specs,
        out_specs=out_specs,
        compiler_params=pltpu.CompilerParams(
            dimension_semantics=("parallel", "arbitrary"),
            vmem_limit_bytes=vmem_limit),
        cost_estimate=pl.CostEstimate(flops=int(flops), transcendentals=0,
                                      bytes_accessed=int(bytes_acc)),
    )(patches, wq)


# ---------------------------------------------------------------------------
# Pass 2: apply BN (pre-folded scale/shift) + optional residual + ReLU.
# Either reads the bf16 conv intermediate, or (small-channel layers)
# recomputes the matmul from the bf16 patch slab and never round-trips y.
# ---------------------------------------------------------------------------
def _bn_from_y_kernel(y_ref, a_ref, b_ref, o_ref):
    out = y_ref[...].astype(jnp.float32) * a_ref[...] + b_ref[...]
    o_ref[...] = jnp.maximum(out, 0.0).astype(o_ref.dtype)


def _bn_from_y_add_kernel(y_ref, a_ref, b_ref, sc_ref, o_ref):
    out = (y_ref[...].astype(jnp.float32) * a_ref[...] + b_ref[...]
           + sc_ref[...].astype(jnp.float32))
    o_ref[...] = jnp.maximum(out, 0.0).astype(o_ref.dtype)


def _bn_recompute_kernel(p_ref, w_ref, a_ref, b_ref, o_ref):
    y = jnp.dot(p_ref[...], w_ref[...], preferred_element_type=jnp.float32)
    out = y * a_ref[...] + b_ref[...]
    o_ref[...] = jnp.maximum(out, 0.0).astype(o_ref.dtype)


def _bn_recompute_add_kernel(p_ref, w_ref, a_ref, b_ref, sc_ref, o_ref):
    y = jnp.dot(p_ref[...], w_ref[...], preferred_element_type=jnp.float32)
    out = y * a_ref[...] + b_ref[...] + sc_ref[...].astype(jnp.float32)
    o_ref[...] = jnp.maximum(out, 0.0).astype(o_ref.dtype)


def _pass2(y_or_patches, wq, scale, shift, sc, out_dtype, tm, vmem_limit,
           recompute):
    m_pad = y_or_patches.shape[0]
    cp = scale.shape[1]
    out_bytes = jnp.dtype(out_dtype).itemsize
    row_out = pl.BlockSpec((tm, cp), lambda i: (i, 0))
    vec = pl.BlockSpec((1, cp), lambda i: (0, 0))
    if recompute:
        kp = y_or_patches.shape[1]
        args = [y_or_patches, wq, scale, shift]
        in_specs = [pl.BlockSpec((tm, kp), lambda i: (i, 0)),
                    pl.BlockSpec((kp, cp), lambda i: (0, 0)), vec, vec]
        kernel = _bn_recompute_kernel if sc is None else _bn_recompute_add_kernel
        flops = 2 * m_pad * kp * cp
        bytes_acc = m_pad * kp * 2 + kp * cp * 2
    else:
        args = [y_or_patches, scale, shift]
        in_specs = [row_out, vec, vec]
        kernel = _bn_from_y_kernel if sc is None else _bn_from_y_add_kernel
        flops = 4 * m_pad * cp
        bytes_acc = m_pad * cp * 2
    if sc is not None:
        args.append(sc)
        in_specs.append(row_out)
        bytes_acc += m_pad * cp * 2
    bytes_acc += 2 * cp * 4 + m_pad * cp * out_bytes
    return pl.pallas_call(
        kernel,
        out_shape=jax.ShapeDtypeStruct((m_pad, cp), out_dtype),
        grid=(m_pad // tm,),
        in_specs=in_specs,
        out_specs=row_out,
        compiler_params=pltpu.CompilerParams(
            dimension_semantics=("parallel",),
            vmem_limit_bytes=vmem_limit),
        cost_estimate=pl.CostEstimate(flops=int(flops), transcendentals=0,
                                      bytes_accessed=int(bytes_acc)),
    )(*args)


# ---------------------------------------------------------------------------
# Plain-JAX glue: im2col (3x3, padding=1, arbitrary stride) + tiling helpers.
# ---------------------------------------------------------------------------
def _im2col_flat(x_nhwc, stride, ho, wo, kp):
    """(N,H,W,C) -> (M, kp); taps ordered kh*3+kw, zero K-tail folded into the
    single concatenate (no second padding pass over the slab)."""
    xp = jnp.pad(x_nhwc, ((0, 0), (1, 1), (1, 1), (0, 0)))
    c = x_nhwc.shape[-1]
    m = x_nhwc.shape[0] * ho * wo
    taps = []
    for kh in range(3):
        for kw in range(3):
            tap = xp[:,
                     kh: kh + stride * (ho - 1) + 1: stride,
                     kw: kw + stride * (wo - 1) + 1: stride,
                     :]
            taps.append(tap.reshape(m, c))
    if kp > 9 * c:
        taps.append(jnp.zeros((m, kp - 9 * c), x_nhwc.dtype))
    return jnp.concatenate(taps, axis=-1)


def _choose_tm(kp, cp, m, store_y, has_shortcut, out_bytes, vmem_limit):
    """Largest M-tile (multiple of 8, <= ceil(M/2)) whose double-buffered
    working set fits the per-generation VMEM budget."""
    budget = int(vmem_limit * 0.8)
    kv = _round_up(kp, 128)                    # VMEM lane padding of patch tile
    sc_row = (2 * 2 * cp) if has_shortcut else 0
    if store_y:
        p1_row = 2 * 2 * kv + 2 * 2 * cp
        p2_row = 2 * 2 * cp + sc_row + 2 * out_bytes * cp
    else:
        p1_row = 2 * 2 * kv
        p2_row = 2 * 2 * kv + sc_row + 2 * out_bytes * cp
    per_row = max(p1_row, p2_row)
    fixed = 2 * kv * cp * 2 + 4 * 16 * cp * 4 + (2 << 20)   # weights+stats+slack
    tm = (budget - fixed) // per_row
    tm = int(max(8, (tm // 8) * 8))
    tm = min(tm, _round_up((m + 1) // 2, 8), 8192)
    return tm


def _fused_conv_bn(patches, w_flat, gamma, beta, shortcut2d, sc_chan_lo, m,
                   planes, out_dtype, vmem_limit):
    """patches: (m, kp) bf16 im2col slab; w_flat: (9*cin, planes) f32."""
    kp = patches.shape[1]
    cp = _round_up(planes, 128)
    # y (bf16) round-trip costs 4*cp B/row; re-reading the patch slab costs
    # 2*kp B/row -> recompute the matmul in pass 2 whenever kp < 2*cp.
    store_y = kp >= 2 * cp
    out_bytes = jnp.dtype(out_dtype).itemsize
    tm = _choose_tm(kp, cp, m, store_y, shortcut2d is not None, out_bytes,
                    vmem_limit)
    m_pad = _round_up(m, 2 * tm)
    ni = m_pad // (2 * tm)

    if m_pad != m:                       # usually avoided (tm capped at ceil(m/2))
        patches = jnp.pad(patches, ((0, m_pad - m), (0, 0)))
    wq = jnp.pad(w_flat.astype(jnp.bfloat16),
                 ((0, kp - w_flat.shape[0]), (0, cp - planes)))

    if store_y:
        y, s_part, q_part = _pass1(patches, wq, tm, ni, True, vmem_limit)
    else:
        s_part, q_part = _pass1(patches, wq, tm, ni, False, vmem_limit)
        y = None

    # Combine the two per-core partials; fold BN into scale/shift (tiny glue).
    s_tot = s_part.reshape(2, 8, cp)[:, 0, :].sum(axis=0)
    q_tot = q_part.reshape(2, 8, cp)[:, 0, :].sum(axis=0)
    inv_count = 1.0 / float(m)           # true count (padded rows contribute 0)
    mu = s_tot * inv_count
    var = jnp.maximum(q_tot * inv_count - mu * mu, 0.0)
    g_p = jnp.pad(gamma.astype(jnp.float32), (0, cp - planes))
    b_p = jnp.pad(beta.astype(jnp.float32), (0, cp - planes))
    scale = g_p * jax.lax.rsqrt(var + _EPS)
    shift = b_p - mu * scale
    scale = scale.reshape(1, cp)
    shift = shift.reshape(1, cp)

    sc = None
    if shortcut2d is not None:
        cin_sc = shortcut2d.shape[1]
        sc = jnp.pad(shortcut2d.astype(jnp.bfloat16),
                     ((0, m_pad - m), (sc_chan_lo, cp - cin_sc - sc_chan_lo)))

    out = _pass2(patches if y is None else y, wq, scale, shift, sc, out_dtype,
                 tm, vmem_limit, recompute=(y is None))
    return out[:m, :planes]


@functools.partial(jax.jit, static_argnames=("stride",))
def res_basic_block(x_nchw, params, *, stride=1):
    """Pallas forward of ResBasicBlock.  x_nchw: (N, Cin, H, W) float32.
    params = (w1, g1, b1, w2, g2, b2); conv weights have shape (9, Cin, Cout)."""
    w1, g1, b1, w2, g2, b2 = params
    inplanes = x_nchw.shape[1]
    planes = w1.shape[2]
    vmem_limit = _vmem_limit_bytes()

    x = jnp.transpose(x_nchw, (0, 2, 3, 1)).astype(jnp.float32)   # NCHW -> NHWC
    n, h, w, _ = x.shape
    ho = (h + 2 - 3) // stride + 1
    wo = (w + 2 - 3) // stride + 1
    m = n * ho * wo

    # conv1 -> bn1 -> relu  (no shortcut; intermediate activation kept in bf16)
    kp1 = max(128, _round_up(9 * inplanes, 16))
    p1 = _im2col_flat(x.astype(jnp.bfloat16), stride, ho, wo, kp1)
    h1 = _fused_conv_bn(p1, w1.reshape(9 * inplanes, planes), g1, b1,
                        None, 0, m, planes, jnp.bfloat16, vmem_limit)
    h1 = h1.reshape(n, ho, wo, planes)

    # conv2 -> bn2 -> (+ shortcut) -> relu
    kp2 = max(128, _round_up(9 * planes, 16))
    p2 = _im2col_flat(h1, 1, ho, wo, kp2)
    if stride != 1 or inplanes != planes:
        # LambdaLayer: x[:, :, ::2, ::2] zero-padded by planes//4 channels/side
        sc = x[:, ::2, ::2, :]
        assert sc.shape[1] == ho and sc.shape[2] == wo, "shortcut shape mismatch"
        sc2d = sc.reshape(m, inplanes)
        sc_lo = planes // 4
    else:
        sc2d = x.reshape(m, inplanes)
        sc_lo = 0
    out = _fused_conv_bn(p2, w2.reshape(9 * planes, planes), g2, b2,
                         sc2d, sc_lo, m, planes, jnp.float32, vmem_limit)

    return jnp.transpose(out.reshape(n, ho, wo, planes), (0, 3, 1, 2))  # NCHW


# ---------------------------------------------------------------------------
# Pure-JAX reference (bf16 conv inputs, f32 accumulation/BN, matching precision)
# ---------------------------------------------------------------------------
def _ref_block(x_nchw, params, *, stride=1):
    w1, g1, b1, w2, g2, b2 = params
    inplanes = x_nchw.shape[1]
    planes = w1.shape[2]
    x = jnp.transpose(x_nchw, (0, 2, 3, 1)).astype(jnp.float32)

    def conv(a, wflat, s):
        wk = wflat.reshape(3, 3, wflat.shape[1], wflat.shape[2]).astype(jnp.bfloat16)
        return jax.lax.conv_general_dilated(
            a.astype(jnp.bfloat16), wk, window_strides=(s, s),
            padding=((1, 1), (1, 1)),
            dimension_numbers=("NHWC", "HWIO", "NHWC"),
            preferred_element_type=jnp.float32)

    def bn(a, g, b):
        mu = jnp.mean(a, axis=(0, 1, 2), keepdims=True)
        var = jnp.mean(jnp.square(a - mu), axis=(0, 1, 2), keepdims=True)
        return ((a - mu) * jax.lax.rsqrt(var + _EPS) * g.reshape(1, 1, 1, -1)
                + b.reshape(1, 1, 1, -1))

    hcur = jax.nn.relu(bn(conv(x, w1, stride), g1, b1))
    h2 = bn(conv(hcur, w2, 1), g2, b2)
    if stride != 1 or inplanes != planes:
        sc = x[:, ::2, ::2, :]
        pad = planes // 4
        sc = jnp.pad(sc, ((0, 0), (0, 0), (0, 0), (pad, pad)))
    else:
        sc = x
    out = jax.nn.relu(h2 + sc)
    return jnp.transpose(out, (0, 3, 1, 2))


# ---------------------------------------------------------------------------
if __name__ == "__main__":
    key = jax.random.PRNGKey(0)
    keys = jax.random.split(key, 3)

    N, CIN, H, W = 2, 4, 16, 16
    x = jax.random.normal(keys[0], (N, CIN, H, W), jnp.float32)

    def make_params(k, cin, planes):
        ks = jax.random.split(k, 6)
        w1 = 0.2 * jax.random.normal(ks[0], (9, cin, planes), jnp.float32)
        g1 = 1.0 + 0.1 * jax.random.normal(ks[1], (planes,), jnp.float32)
        b1 = 0.1 * jax.random.normal(ks[2], (planes,), jnp.float32)
        w2 = 0.2 * jax.random.normal(ks[3], (9, planes, planes), jnp.float32)
        g2 = 1.0 + 0.1 * jax.random.normal(ks[4], (planes,), jnp.float32)
        b2 = 0.1 * jax.random.normal(ks[5], (planes,), jnp.float32)
        return (w1, g1, b1, w2, g2, b2)

    # Case 1: identity shortcut (inplanes == planes, stride == 1)
    params_id = make_params(keys[1], CIN, CIN)
    out1 = res_basic_block(x, params_id, stride=1)
    ref1 = _ref_block(x, params_id, stride=1)

    # Case 2: downsample shortcut (stride == 2, planes = 2 * inplanes)
    params_ds = make_params(keys[2], CIN, 2 * CIN)
    out2 = res_basic_block(x, params_ds, stride=2)
    ref2 = _ref_block(x, params_ds, stride=2)

    jax.block_until_ready((out1, out2))

    assert out1.shape == (N, CIN, H, W), out1.shape
    assert out2.shape == (N, 2 * CIN, H // 2, W // 2), out2.shape
    err1 = float(jnp.max(jnp.abs(out1 - ref1)))
    err2 = float(jnp.max(jnp.abs(out2 - ref2)))
    assert jnp.allclose(out1, ref1, atol=1e-2, rtol=1e-2), err1
    assert jnp.allclose(out2, ref2, atol=1e-2, rtol=1e-2), err2

    print("KERNEL_OK")
</pallas_src>

<mosaic_0001>
module attributes {stable_mosaic.version = 11 : i64} {
  func.func @_conv_stats_only_kernel(%arg0: i32, %arg1: i32, %arg2: memref<256x128xbf16, #tpu.memory_space<vmem>>, %arg3: memref<128x128xbf16, #tpu.memory_space<vmem>>, %arg4: memref<8x128xf32, #tpu.memory_space<vmem>>, %arg5: memref<8x128xf32, #tpu.memory_space<vmem>>) attributes {dimension_semantics = [#tpu.dimension_semantics<parallel>, #tpu.dimension_semantics<arbitrary>], iteration_bounds = array<i64: 2, 1>, scalar_prefetch = 0 : i64, scratch_operands = 0 : i64, tpu.core_type = #tpu.core_type<tc>, window_params = [{transform_indices = @transform_0, window_bounds = array<i64: 256, 128>}, {pipeline_mode = #tpu.pipeline_mode<synchronous>, transform_indices = @transform_1, window_bounds = array<i64: 128, 128>}, {transform_indices = @transform_2, window_bounds = array<i64: 8, 128>}, {transform_indices = @transform_3, window_bounds = array<i64: 8, 128>}]} {
    %c0_i32 = arith.constant 0 : i32
    %0 = arith.cmpi eq, %arg1, %c0_i32 : i32
    %1 = arith.extui %0 : i1 to i32
    %c0_i32_0 = arith.constant 0 : i32
    %2 = arith.cmpi ne, %1, %c0_i32_0 : i32
    scf.if %2 {
      %cst_14 = arith.constant 0.000000e+00 : f32
      %21 = vector.broadcast %cst_14 : f32 to vector<8x128xf32>
      %c0_15 = arith.constant 0 : index
      %c0_16 = arith.constant 0 : index
      %22 = vector.load %arg4[%c0_15, %c0_16] : memref<8x128xf32, #tpu.memory_space<vmem>>, vector<8x128xf32>
      tpu.vector_store %arg4[%c0_15, %c0_16], %21 {strides = array<i32>} : memref<8x128xf32, #tpu.memory_space<vmem>>, vector<8x128xf32>,
      %cst_17 = arith.constant 0.000000e+00 : f32
      %23 = vector.broadcast %cst_17 : f32 to vector<8x128xf32>
      %c0_18 = arith.constant 0 : index
      %c0_19 = arith.constant 0 : index
      %24 = vector.load %arg5[%c0_18, %c0_19] : memref<8x128xf32, #tpu.memory_space<vmem>>, vector<8x128xf32>
      tpu.vector_store %arg5[%c0_18, %c0_19], %23 {strides = array<i32>} : memref<8x128xf32, #tpu.memory_space<vmem>>, vector<8x128xf32>,
    } else {
    }
    %c0 = arith.constant 0 : index
    %c0_1 = arith.constant 0 : index
    %3 = vector.load %arg2[%c0, %c0_1] : memref<256x128xbf16, #tpu.memory_space<vmem>>, vector<256x128xbf16>
    %c0_2 = arith.constant 0 : index
    %c0_3 = arith.constant 0 : index
    %4 = vector.load %arg3[%c0_2, %c0_3] : memref<128x128xbf16, #tpu.memory_space<vmem>>, vector<128x128xbf16>
    %cst = arith.constant dense<0.000000e+00> : vector<256x128xf32>
    %5 = tpu.matmul %3, %4, %cst {dimension_numbers = #tpu.dot_dimension_numbers<[1], [0], [0], [1], [0, 0, 1, 1], [], []>} : vector<256x128xbf16>, vector<128x128xbf16>, vector<256x128xf32> -> vector<256x128xf32>
    %c0_4 = arith.constant 0 : index
    %c0_5 = arith.constant 0 : index
    %6 = vector.load %arg4[%c0_4, %c0_5] : memref<8x128xf32, #tpu.memory_space<vmem>>, vector<8x128xf32>
    %cst_6 = arith.constant dense<0.000000e+00> : vector<128xf32>
    %7 = vector.multi_reduction <add>, %5, %cst_6 [0] : vector<256x128xf32> to vector<128xf32>
    %8 = vector.shape_cast %7 : vector<128xf32> to vector<1x128xf32>
    %9 = vector.shape_cast %8 : vector<1x128xf32> to vector<1x128xf32>
    %10 = vector.broadcast %9 : vector<1x128xf32> to vector<8x128xf32>
    %11 = arith.addf %6, %10 : vector<8x128xf32>
    %c0_7 = arith.constant 0 : index
    %c0_8 = arith.constant 0 : index
    %12 = vector.load %arg4[%c0_7, %c0_8] : memref<8x128xf32, #tpu.memory_space<vmem>>, vector<8x128xf32>
    tpu.vector_store %arg4[%c0_7, %c0_8], %11 {strides = array<i32>} : memref<8x128xf32, #tpu.memory_space<vmem>>, vector<8x128xf32>,
    %c0_9 = arith.constant 0 : index
    %c0_10 = arith.constant 0 : index
    %13 = vector.load %arg5[%c0_9, %c0_10] : memref<8x128xf32, #tpu.memory_space<vmem>>, vector<8x128xf32>
    %14 = arith.mulf %5, %5 : vector<256x128xf32>
    %cst_11 = arith.constant dense<0.000000e+00> : vector<128xf32>
    %15 = vector.multi_reduction <add>, %14, %cst_11 [0] : vector<256x128xf32> to vector<128xf32>
    %16 = vector.shape_cast %15 : vector<128xf32> to vector<1x128xf32>
    %17 = vector.shape_cast %16 : vector<1x128xf32> to vector<1x128xf32>
    %18 = vector.broadcast %17 : vector<1x128xf32> to vector<8x128xf32>
    %19 = arith.addf %13, %18 : vector<8x128xf32>
    %c0_12 = arith.constant 0 : index
    %c0_13 = arith.constant 0 : index
    %20 = vector.load %arg5[%c0_12, %c0_13] : memref<8x128xf32, #tpu.memory_space<vmem>>, vector<8x128xf32>
    tpu.vector_store %arg5[%c0_12, %c0_13], %19 {strides = array<i32>} : memref<8x128xf32, #tpu.memory_space<vmem>>, vector<8x128xf32>,
    return
  }
  func.func @transform_0(%arg0: i32, %arg1: i32) -> (i32, i32) {
    %c1_i32 = arith.constant 1 : i32
    %0 = arith.muli %arg0, %c1_i32 : i32
    %1 = arith.addi %0, %arg1 : i32
    %c0_i32 = arith.constant 0 : i32
    %c0_i32_0 = arith.constant 0 : i32
    return %1, %c0_i32 : i32, i32
  }
  func.func @transform_1(%arg0: i32, %arg1: i32) -> (i32, i32) {
    %c0_i32 = arith.constant 0 : i32
    %c0_i32_0 = arith.constant 0 : i32
    %c0_i32_1 = arith.constant 0 : i32
    return %c0_i32, %c0_i32_0 : i32, i32
  }
  func.func @transform_2(%arg0: i32, %arg1: i32) -> (i32, i32) {
    %c0_i32 = arith.constant 0 : i32
    %c0_i32_0 = arith.constant 0 : i32
    return %arg0, %c0_i32 : i32, i32
  }
  func.func @transform_3(%arg0: i32, %arg1: i32) -> (i32, i32) {
    %c0_i32 = arith.constant 0 : i32
    %c0_i32_0 = arith.constant 0 : i32
    return %arg0, %c0_i32 : i32, i32
  }
}

module attributes {stable_mosaic.version = 11 : i64} {
  func.func @_bn_recompute_kernel(%arg0: i32, %arg1: memref<256x128xbf16, #tpu.memory_space<vmem>>, %arg2: memref<128x128xbf16, #tpu.memory_space<vmem>>, %arg3: memref<1x128xf32, #tpu.memory_space<vmem>>, %arg4: memref<1x128xf32, #tpu.memory_space<vmem>>, %arg5: memref<256x128xbf16, #tpu.memory_space<vmem>>) attributes {dimension_semantics = [#tpu.dimension_semantics<parallel>], iteration_bounds = array<i64: 2>, scalar_prefetch = 0 : i64, scratch_operands = 0 : i64, tpu.core_type = #tpu.core_type<tc>, window_params = [{transform_indices = @transform_0, window_bounds = array<i64: 256, 128>}, {pipeline_mode = #tpu.pipeline_mode<synchronous>, transform_indices = @transform_1, window_bounds = array<i64: 128, 128>}, {pipeline_mode = #tpu.pipeline_mode<synchronous>, transform_indices = @transform_2, window_bounds = array<i64: 1, 128>}, {pipeline_mode = #tpu.pipeline_mode<synchronous>, transform_indices = @transform_3, window_bounds = array<i64: 1, 128>}, {transform_indices = @transform_4, window_bounds = array<i64: 256, 128>}]} {
    %c0 = arith.constant 0 : index
    %c0_0 = arith.constant 0 : index
    %0 = vector.load %arg1[%c0, %c0_0] : memref<256x128xbf16, #tpu.memory_space<vmem>>, vector<256x128xbf16>
    %c0_1 = arith.constant 0 : index
    %c0_2 = arith.constant 0 : index
    %1 = vector.load %arg2[%c0_1, %c0_2] : memref<128x128xbf16, #tpu.memory_space<vmem>>, vector<128x128xbf16>
    %cst = arith.constant dense<0.000000e+00> : vector<256x128xf32>
    %2 = tpu.matmul %0, %1, %cst {dimension_numbers = #tpu.dot_dimension_numbers<[1], [0], [0], [1], [0, 0, 1, 1], [], []>} : vector<256x128xbf16>, vector<128x128xbf16>, vector<256x128xf32> -> vector<256x128xf32>
    %c0_3 = arith.constant 0 : index
    %c0_4 = arith.constant 0 : index
    %3 = vector.load %arg3[%c0_3, %c0_4] : memref<1x128xf32, #tpu.memory_space<vmem>>, vector<1x128xf32>
    %4 = vector.broadcast %3 : vector<1x128xf32> to vector<256x128xf32>
    %5 = arith.mulf %2, %4 : vector<256x128xf32>
    %c0_5 = arith.constant 0 : index
    %c0_6 = arith.constant 0 : index
    %6 = vector.load %arg4[%c0_5, %c0_6] : memref<1x128xf32, #tpu.memory_space<vmem>>, vector<1x128xf32>
    %7 = vector.broadcast %6 : vector<1x128xf32> to vector<256x128xf32>
    %8 = arith.addf %5, %7 : vector<256x128xf32>
    %cst_7 = arith.constant 0.000000e+00 : f32
    %9 = vector.broadcast %cst_7 : f32 to vector<256x128xf32>
    %10 = arith.maximumf %8, %9 : vector<256x128xf32>
    %11 = arith.truncf %10 : vector<256x128xf32> to vector<256x128xbf16>
    %c0_8 = arith.constant 0 : index
    %c0_9 = arith.constant 0 : index
    %12 = vector.load %arg5[%c0_8, %c0_9] : memref<256x128xbf16, #tpu.memory_space<vmem>>, vector<256x128xbf16>
    tpu.vector_store %arg5[%c0_8, %c0_9], %11 {strides = array<i32>} : memref<256x128xbf16, #tpu.memory_space<vmem>>, vector<256x128xbf16>,
    return
  }
  func.func @transform_0(%arg0: i32) -> (i32, i32) {
    %c0_i32 = arith.constant 0 : i32
    %c0_i32_0 = arith.constant 0 : i32
    return %arg0, %c0_i32 : i32, i32
  }
  func.func @transform_1(%arg0: i32) -> (i32, i32) {
    %c0_i32 = arith.constant 0 : i32
    %c0_i32_0 = arith.constant 0 : i32
    %c0_i32_1 = arith.constant 0 : i32
    return %c0_i32, %c0_i32_0 : i32, i32
  }
  func.func @transform_2(%arg0: i32) -> (i32, i32) {
    %c0_i32 = arith.constant 0 : i32
    %c0_i32_0 = arith.constant 0 : i32
    %c0_i32_1 = arith.constant 0 : i32
    return %c0_i32, %c0_i32_0 : i32, i32
  }
  func.func @transform_3(%arg0: i32) -> (i32, i32) {
    %c0_i32 = arith.constant 0 : i32
    %c0_i32_0 = arith.constant 0 : i32
    %c0_i32_1 = arith.constant 0 : i32
    return %c0_i32, %c0_i32_0 : i32, i32
  }
  func.func @transform_4(%arg0: i32) -> (i32, i32) {
    %c0_i32 = arith.constant 0 : i32
    %c0_i32_0 = arith.constant 0 : i32
    return %arg0, %c0_i32 : i32, i32
  }
}

module attributes {stable_mosaic.version = 11 : i64} {
  func.func @_bn_recompute_add_kernel(%arg0: i32, %arg1: memref<256x128xbf16, #tpu.memory_space<vmem>>, %arg2: memref<128x128xbf16, #tpu.memory_space<vmem>>, %arg3: memref<1x128xf32, #tpu.memory_space<vmem>>, %arg4: memref<1x128xf32, #tpu.memory_space<vmem>>, %arg5: memref<256x128xbf16, #tpu.memory_space<vmem>>, %arg6: memref<256x128xf32, #tpu.memory_space<vmem>>) attributes {dimension_semantics = [#tpu.dimension_semantics<parallel>], iteration_bounds = array<i64: 2>, scalar_prefetch = 0 : i64, scratch_operands = 0 : i64, tpu.core_type = #tpu.core_type<tc>, window_params = [{transform_indices = @transform_0, window_bounds = array<i64: 256, 128>}, {pipeline_mode = #tpu.pipeline_mode<synchronous>, transform_indices = @transform_1, window_bounds = array<i64: 128, 128>}, {pipeline_mode = #tpu.pipeline_mode<synchronous>, transform_indices = @transform_2, window_bounds = array<i64: 1, 128>}, {pipeline_mode = #tpu.pipeline_mode<synchronous>, transform_indices = @transform_3, window_bounds = array<i64: 1, 128>}, {transform_indices = @transform_4, window_bounds = array<i64: 256, 128>}, {transform_indices = @transform_5, window_bounds = array<i64: 256, 128>}]} {
    %c0 = arith.constant 0 : index
    %c0_0 = arith.constant 0 : index
    %0 = vector.load %arg1[%c0, %c0_0] : memref<256x128xbf16, #tpu.memory_space<vmem>>, vector<256x128xbf16>
    %c0_1 = arith.constant 0 : index
    %c0_2 = arith.constant 0 : index
    %1 = vector.load %arg2[%c0_1, %c0_2] : memref<128x128xbf16, #tpu.memory_space<vmem>>, vector<128x128xbf16>
    %cst = arith.constant dense<0.000000e+00> : vector<256x128xf32>
    %2 = tpu.matmul %0, %1, %cst {dimension_numbers = #tpu.dot_dimension_numbers<[1], [0], [0], [1], [0, 0, 1, 1], [], []>} : vector<256x128xbf16>, vector<128x128xbf16>, vector<256x128xf32> -> vector<256x128xf32>
    %c0_3 = arith.constant 0 : index
    %c0_4 = arith.constant 0 : index
    %3 = vector.load %arg3[%c0_3, %c0_4] : memref<1x128xf32, #tpu.memory_space<vmem>>, vector<1x128xf32>
    %4 = vector.broadcast %3 : vector<1x128xf32> to vector<256x128xf32>
    %5 = arith.mulf %2, %4 : vector<256x128xf32>
    %c0_5 = arith.constant 0 : index
    %c0_6 = arith.constant 0 : index
    %6 = vector.load %arg4[%c0_5, %c0_6] : memref<1x128xf32, #tpu.memory_space<vmem>>, vector<1x128xf32>
    %7 = vector.broadcast %6 : vector<1x128xf32> to vector<256x128xf32>
    %8 = arith.addf %5, %7 : vector<256x128xf32>
    %c0_7 = arith.constant 0 : index
    %c0_8 = arith.constant 0 : index
    %9 = vector.load %arg5[%c0_7, %c0_8] : memref<256x128xbf16, #tpu.memory_space<vmem>>, vector<256x128xbf16>
    %10 = arith.extf %9 : vector<256x128xbf16> to vector<256x128xf32>
    %11 = arith.addf %8, %10 : vector<256x128xf32>
    %cst_9 = arith.constant 0.000000e+00 : f32
    %12 = vector.broadcast %cst_9 : f32 to vector<256x128xf32>
    %13 = arith.maximumf %11, %12 : vector<256x128xf32>
    %c0_10 = arith.constant 0 : index
    %c0_11 = arith.constant 0 : index
    %14 = vector.load %arg6[%c0_10, %c0_11] : memref<256x128xf32, #tpu.memory_space<vmem>>, vector<256x128xf32>
    tpu.vector_store %arg6[%c0_10, %c0_11], %13 {strides = array<i32>} : memref<256x128xf32, #tpu.memory_space<vmem>>, vector<256x128xf32>,
    return
  }
  func.func @transform_0(%arg0: i32) -> (i32, i32) {
    %c0_i32 = arith.constant 0 : i32
    %c0_i32_0 = arith.constant 0 : i32
    return %arg0, %c0_i32 : i32, i32
  }
  func.func @transform_1(%arg0: i32) -> (i32, i32) {
    %c0_i32 = arith.constant 0 : i32
    %c0_i32_0 = arith.constant 0 : i32
    %c0_i32_1 = arith.constant 0 : i32
    return %c0_i32, %c0_i32_0 : i32, i32
  }
  func.func @transform_2(%arg0: i32) -> (i32, i32) {
    %c0_i32 = arith.constant 0 : i32
    %c0_i32_0 = arith.constant 0 : i32
    %c0_i32_1 = arith.constant 0 : i32
    return %c0_i32, %c0_i32_0 : i32, i32
  }
  func.func @transform_3(%arg0: i32) -> (i32, i32) {
    %c0_i32 = arith.constant 0 : i32
    %c0_i32_0 = arith.constant 0 : i32
    %c0_i32_1 = arith.constant 0 : i32
    return %c0_i32, %c0_i32_0 : i32, i32
  }
  func.func @transform_4(%arg0: i32) -> (i32, i32) {
    %c0_i32 = arith.constant 0 : i32
    %c0_i32_0 = arith.constant 0 : i32
    return %arg0, %c0_i32 : i32, i32
  }
  func.func @transform_5(%arg0: i32) -> (i32, i32) {
    %c0_i32 = arith.constant 0 : i32
    %c0_i32_0 = arith.constant 0 : i32
    return %arg0, %c0_i32 : i32, i32
  }
}

</mosaic_0001>

<bundles_post_ra>
// kernel: res_basic_block.4
= control target key start
LH: loop header
LB: loop body
LE: loop exit
PB: predicated region body
PF: predicated region fallthrough
CT: control target
= control target key end

     0   :  { %s981_s12 = smov 0   ;;  %s983_s13 = smov 0   ;;  %s1084_s0 = inlined_call_operand.vmem [shape: bf16[512,128], index: 0, kind: input, shape index: {}]   ;;  %s1085_s1 = inlined_call_operand.vmem [shape: bf16[128,128], index: 1, kind: input, shape index: {}]   ;;  %s1086_s2 = inlined_call_operand.vmem [shape: f32[16,128], index: 2, kind: output, shape index: {0}]   ;;  %s1087_s3 = inlined_call_operand.vmem [shape: f32[16,128], index: 3, kind: output, shape index: {1}]  }
   0x1   :  { %s985_s14 = smov 0  }
   0x2 LB: > { %s26_s15 = sadd.s32 1, %s955_s13  ;;  %p769_p0 = scmp.ge.s32.totalorder %s959_s14, 1  ;;  %s959_s14 = sphi %s985_s14, %s14_s14   ;;  %s955_s13 = sphi %s983_s13, %s1089_s13   ;;  %s951_s12 = sphi %s981_s12, %s1088_s12  }
   0x3   : > { %p28_p1 = scmp.ge.s32.totalorder %s26_s15, 2  ;;  %p157_p2 = scmp.lt.s32.totalorder %s959_s14, 3 }
   0x5   : > { %s1091_s15 = smov (%p28_p1, %s26_s15), 0  ;;  %p158_p3 = pnand %p769_p0, %p157_p2 }
   0x6   : > { %s770_s18 = sshll.u32 (!%p158_p3), %s951_s12, 5  ;;  %p193_p5 = scmp.lt.s32.totalorder (!%p158_p3), %s951_s12, 1 }
   0x7   : > { %161 = sbr.rel (%p158_p3) target bundleno = 321 (0x141), region = 28  ;;  %p187_p4 = scmp.lt.s32.totalorder (!%p158_p3), %s770_s18, 63 }
   0xc   : > { %v913_v0 = vld [vmem:[%s1085_s1 + $0x38] sm:$0xff]   ;;  %v914_v1 = vld [vmem:[%s1085_s1 + $0x30] sm:$0xff]   ;;  %s1093_s18 = smov (!%p187_p4, %s770_s18), 63  ;;  %v915_v2 = vld [vmem:[%s1085_s1 + $0x28] sm:$0xff]   ;;  %s1095_s12 = smov (!%p193_p5, %s951_s12), 1 }
   0xd   : > { %824 = vmatprep.subr.bf16.mxu0 %v913_v0  ;;  %872 = vmatprep.subr.bf16.mxu1 %v913_v0  ;;  %s771_s23 = sshll.u32 %s1093_s18, 2  ;;  %v916_v3 = vld [vmem:[%s1085_s1 + $0x20] sm:$0xff]   ;;  %v917_v5 = vld [vmem:[%s1085_s1 + $0x18] sm:$0xff]   ;;  %v918_v6 = vld [vmem:[%s1085_s1 + $0x10] sm:$0xff]   ;;  %s772_s10 = sshll.u32 %s1095_s12, 3 }
   0xe   : > { %825 = vmatpush3.bf16.msra.mxu0 %v913_v0  ;;  %880 = vmatpush3.bf16.msra.mxu1 %v913_v0  ;;  %s1014_s26 = scalar_lea.vmem %s1084_s0, %s771_s23  ;;  %v919_v8 = vld [vmem:[%s1085_s1 + $0x8] sm:$0xff]   ;;  %v920_v9 = vld [vmem:[%s1085_s1] sm:$0xff]   ;;  %s196_s17 = scalar_lea.vmem %s1086_s2, %s772_s10 }
   0xf   : > { %826 = vmatprep.subr.bf16.mxu0 %v914_v1  ;;  %873 = vmatprep.subr.bf16.mxu1 %v914_v1  ;;  %v921_v4 = vld [vmem:[%s1014_s26] sm:$0xff]   ;;  %v922_v10 = vld [vmem:[%s1014_s26 + $0x8] sm:$0xff]   ;;  %v923_v12 = vld [vmem:[%s1014_s26 + $0x10] sm:$0xff]   ;;  %s200_s20 = scalar_lea.vmem %s1087_s3, %s772_s10 }
  0x10   : > { %840 = vmatprep.mubr.bf16.mxu0 %v921_v4  ;;  %v929_v7 = vld [vmem:[%s1014_s26 + $0x40] sm:$0xff]   ;;  %v930_v11 = vld [vmem:[%s1014_s26 + $0x48] sm:$0xff]   ;;  %v931_v13 = vld [vmem:[%s1014_s26 + $0x50] sm:$0xff]  }
  0x11   : > { %856 = vmatprep.mubr.bf16.mxu1 %v929_v7  ;;  %v924_v14 = vld [vmem:[%s1014_s26 + $0x18] sm:$0xff]   ;;  %v925_v16 = vld [vmem:[%s1014_s26 + $0x20] sm:$0xff]   ;;  %v926_v18 = vld [vmem:[%s1014_s26 + $0x28] sm:$0xff]  }
  0x12   : > { %827 = vmatpush3.bf16.msra.mxu0 %v914_v1  ;;  %881 = vmatpush3.bf16.msra.mxu1 %v914_v1  ;;  %v932_v15 = vld [vmem:[%s1014_s26 + $0x58] sm:$0xff]   ;;  %v933_v17 = vld [vmem:[%s1014_s26 + $0x60] sm:$0xff]   ;;  %v934_v19 = vld [vmem:[%s1014_s26 + $0x68] sm:$0xff]  }
  0x13   : > { %828 = vmatprep.subr.bf16.mxu0 %v915_v2  ;;  %874 = vmatprep.subr.bf16.mxu1 %v915_v2  ;;  %v927_v20 = vld [vmem:[%s1014_s26 + $0x30] sm:$0xff]   ;;  %v928_v22 = vld [vmem:[%s1014_s26 + $0x38] sm:$0xff]  }
  0x14   : > { %v935_v21 = vld [vmem:[%s1014_s26 + $0x70] sm:$0xff]   ;;  %v936_v23 = vld [vmem:[%s1014_s26 + $0x78] sm:$0xff]  }
  0x16   : > { %829 = vmatpush3.bf16.msra.mxu0 %v915_v2  ;;  %882 = vmatpush3.bf16.msra.mxu1 %v915_v2 }
  0x17   : > { %830 = vmatprep.subr.bf16.mxu0 %v916_v3  ;;  %875 = vmatprep.subr.bf16.mxu1 %v916_v3 }
  0x1a   : > { %831 = vmatpush3.bf16.msra.mxu0 %v916_v3  ;;  %883 = vmatpush3.bf16.msra.mxu1 %v916_v3 }
  0x1b   : > { %832 = vmatprep.subr.bf16.mxu0 %v917_v5  ;;  %876 = vmatprep.subr.bf16.mxu1 %v917_v5 }
  0x1e   : > { %833 = vmatpush3.bf16.msra.mxu0 %v917_v5  ;;  %884 = vmatpush3.bf16.msra.mxu1 %v917_v5 }
  0x1f   : > { %834 = vmatprep.subr.bf16.mxu0 %v918_v6  ;;  %877 = vmatprep.subr.bf16.mxu1 %v918_v6 }
  0x22   : > { %835 = vmatpush3.bf16.msra.mxu0 %v918_v6  ;;  %885 = vmatpush3.bf16.msra.mxu1 %v918_v6 }
  0x23   : > { %836 = vmatprep.subr.bf16.mxu0 %v919_v8  ;;  %878 = vmatprep.subr.bf16.mxu1 %v919_v8 }
  0x26   : > { %837 = vmatpush3.bf16.msra.mxu0 %v919_v8  ;;  %886 = vmatpush3.bf16.msra.mxu1 %v919_v8 }
  0x27   : > { %838 = vmatprep.subr.bf16.mxu0 %v920_v9  ;;  %879 = vmatprep.subr.bf16.mxu1 %v920_v9 }
  0x2a   : > { %839 = vmatpush3.bf16.msra.mxu0 %v920_v9  ;;  %887 = vmatpush3.bf16.msra.mxu1 %v920_v9 }
  0x2d   : > { %841 = vmatmul.mubr.bf16.vlgmr.msra.gmra.mxu0 %v922_v10  ;;  %857 = vmatmul.mubr.bf16.vlgmr.msra.gmra.mxu1 %v930_v11 }
  0x2e   : > { %844 = vmatprep.mubr.bf16.mxu0 %v923_v12  ;;  %860 = vmatprep.mubr.bf16.mxu1 %v931_v13 }
  0x35   : > { %845 = vmatmul.mubr.bf16.gmra.mxu0 %v924_v14  ;;  %861 = vmatmul.mubr.bf16.gmra.mxu1 %v932_v15 }
  0x36   : > { %848 = vmatprep.mubr.bf16.mxu0 %v925_v16  ;;  %864 = vmatprep.mubr.bf16.mxu1 %v933_v17 }
  0x3d   : > { %849 = vmatmul.mubr.bf16.gmra.mxu0 %v926_v18  ;;  %865 = vmatmul.mubr.bf16.gmra.mxu1 %v934_v19 }
  0x3e   : > { %852 = vmatprep.mubr.bf16.mxu0 %v927_v20  ;;  %868 = vmatprep.mubr.bf16.mxu1 %v935_v21 }
  0x45   : > { %853 = vmatmul.mubr.bf16.gmra.mxu0 %v928_v22  ;;  %869 = vmatmul.mubr.bf16.gmra.mxu1 %v936_v23 }
  0xed   : > { %v842_v24 = vpop.f32.mrf.mxu0  ;;  %v1047_v25 = vpop.f32.mrf.mxu1 }
  0xee   : > { %v604_v35 = vmul.f32 %v842_v24, %v842_v24 }
  0xef   : > { %v434_v26 = vpop.f32.mrf.mxu0  ;;  %v1049_v28 = vpop.f32.mrf.mxu1 }
  0xf0   : > { %v602_v30 = vmul.f32 %v434_v26, %v434_v26 }
  0xf1   : > { %v843_v27 = vpop.f32.mrf.mxu0  ;;  %v1051_v34 = vpop.f32.mrf.mxu1 }
  0xf2   : > { %v605_v39 = vmul.f32 %v843_v27, %v843_v27 }
  0xf3   : > { %v437_v29 = vpop.f32.mrf.mxu0  ;;  %v501_v43 = vpop.f32.mrf.mxu1 }
  0xf4   : > { %v562_v31 = vadd.f32 %v437_v29, %v434_v26  ;;  %v603_v32 = vmul.f32 %v437_v29, %v437_v29 }
  0xf5   : > { %v846_v33 = vpop.f32.mrf.mxu0  ;;  %v1053_v52 = vpop.f32.mrf.mxu1 }
  0xf6   : > { %v563_v36 = vadd.f32 %v842_v24, %v562_v31  ;;  %v634_v37 = vadd.f32 %v603_v32, %v602_v30  ;;  %v608_v53 = vmul.f32 %v846_v33, %v846_v33 }
  0xf7   : > { %v450_v38 = vpop.f32.mrf.mxu0  ;;  %v514_v61 = vpop.f32.mrf.mxu1 }
  0xf8   : > { %v635_v40 = vadd.f32 %v634_v37, %v604_v35  ;;  %v564_v41 = vadd.f32 %v843_v27, %v563_v36  ;;  %v606_v45 = vmul.f32 %v450_v38, %v450_v38 }
  0xf9   : > { %v847_v42 = vpop.f32.mrf.mxu0  ;;  %v863_v6 = vpop.f32.mrf.mxu1 }
  0xfa   : > { %v565_v44 = vadd.f32 %v564_v41, %v450_v38  ;;  %v636_v46 = vadd.f32 %v635_v40, %v605_v39  ;;  %v609_v57 = vmul.f32 %v847_v42, %v847_v42  ;;  %v619_v38 = vmul.f32 %v501_v43, %v501_v43 }
  0xfb   : > { %v453_v47 = vpop.f32.mrf.mxu0  ;;  %v517_v15 = vpop.f32.mrf.mxu1  ;;  %v620_v41 = vmul.f32 %v1047_v25, %v1047_v25 }
  0xfc   : > { %v637_v48 = vadd.f32 %v636_v46, %v606_v45  ;;  %v566_v49 = vadd.f32 %v565_v44, %v453_v47  ;;  %v607_v50 = vmul.f32 %v453_v47, %v453_v47  ;;  %v621_v45 = vmul.f32 %v1051_v34, %v1051_v34 }
  0xfd   : > { %v850_v51 = vpop.f32.mrf.mxu0  ;;  %v866_v23 = vpop.f32.mrf.mxu1 }
  0xfe   : > { %v567_v54 = vadd.f32 %v846_v33, %v566_v49  ;;  %v638_v55 = vadd.f32 %v637_v48, %v607_v50  ;;  %v612_v7 = vmul.f32 %v850_v51, %v850_v51  ;;  %v618_v33 = vmul.f32 %v1049_v28, %v1049_v28 }
  0xff   : > { %v466_v56 = vpop.f32.mrf.mxu0  ;;  %v530_v32 = vpop.f32.mrf.mxu1  ;;  %v622_v50 = vmul.f32 %v514_v61, %v514_v61 }
 0x100   : > { %v639_v58 = vadd.f32 %v638_v55, %v608_v53  ;;  %v568_v59 = vadd.f32 %v847_v42, %v567_v54  ;;  %v610_v63 = vmul.f32 %v466_v56, %v466_v56  ;;  %v623_v53 = vmul.f32 %v517_v15, %v517_v15 }
 0x101   : > { %v851_v60 = vpop.f32.mrf.mxu0  ;;  %v867_v40 = vpop.f32.mrf.mxu1  ;;  %v624_v55 = vmul.f32 %v1053_v52, %v1053_v52 }
 0x102   : > { %v569_v62 = vadd.f32 %v568_v59, %v466_v56  ;;  %v640_v0 = vadd.f32 %v639_v58, %v609_v57  ;;  %v613_v11 = vmul.f32 %v851_v60, %v851_v60  ;;  %v625_v57 = vmul.f32 %v863_v6, %v863_v6 }
 0x103   : > { %v469_v1 = vpop.f32.mrf.mxu0  ;;  %v533_v48 = vpop.f32.mrf.mxu1 }
 0x104   : > { %v641_v2 = vadd.f32 %v640_v0, %v610_v63  ;;  %v570_v3 = vadd.f32 %v569_v62, %v469_v1  ;;  %v611_v4 = vmul.f32 %v469_v1, %v469_v1  ;;  %v627_v1 = vmul.f32 %v533_v48, %v533_v48 }
 0x105   : > { %v854_v5 = vpop.f32.mrf.mxu0  ;;  %v870_v54 = vpop.f32.mrf.mxu1 }
 0x106   : > { %v571_v8 = vadd.f32 %v850_v51, %v570_v3  ;;  %v642_v9 = vadd.f32 %v641_v2, %v611_v4  ;;  %v616_v24 = vmul.f32 %v854_v5, %v854_v5  ;;  %v628_v3 = vmul.f32 %v866_v23, %v866_v23 }
 0x107   : > { %v482_v10 = vpop.f32.mrf.mxu0 }
 0x108   : > { %v643_v12 = vadd.f32 %v642_v9, %v612_v7  ;;  %v572_v13 = vadd.f32 %v851_v60, %v571_v8  ;;  %v614_v17 = vmul.f32 %v482_v10, %v482_v10  ;;  %v546_v60 = vpop.f32.mrf.mxu1  ;;  %v629_v7 = vmul.f32 %v867_v40, %v867_v40 }
 0x109   : > { %v855_v14 = vpop.f32.mrf.mxu0 }
 0x10a   : > { %v573_v16 = vadd.f32 %v572_v13, %v482_v10  ;;  %v644_v18 = vadd.f32 %v643_v12, %v613_v11  ;;  %v617_v29 = vmul.f32 %v855_v14, %v855_v14  ;;  %v871_v2 = vpop.f32.mrf.mxu1  ;;  %v630_v11 = vmul.f32 %v546_v60, %v546_v60 }
 0x10b   : > { %v485_v19 = vpop.f32.mrf.mxu0 }
 0x10c   : > { %v645_v20 = vadd.f32 %v644_v18, %v614_v17  ;;  %v574_v21 = vadd.f32 %v573_v16, %v485_v19  ;;  %v615_v22 = vmul.f32 %v485_v19, %v485_v19  ;;  %v633_v18 = vmul.f32 %v871_v2, %v871_v2 }
 0x10e   : > { %v575_v26 = vadd.f32 %v854_v5, %v574_v21  ;;  %v646_v27 = vadd.f32 %v645_v20, %v615_v22 }
 0x110   : > { %v576_v30 = vadd.f32 %v855_v14, %v575_v26  ;;  %v647_v31 = vadd.f32 %v646_v27, %v616_v24 }
 0x112   : > { %v648_v35 = vadd.f32 %v647_v31, %v617_v29  ;;  %v577_v36 = vadd.f32 %v576_v30, %v1049_v28 }
 0x114   : > { %v578_v37 = vadd.f32 %v577_v36, %v501_v43  ;;  %v649_v39 = vadd.f32 %v648_v35, %v618_v33 }
 0x116   : > { %v579_v42 = vadd.f32 %v1047_v25, %v578_v37  ;;  %v650_v44 = vadd.f32 %v649_v39, %v619_v38 }
 0x118   : > { %v651_v46 = vadd.f32 %v650_v44, %v620_v41  ;;  %v580_v47 = vadd.f32 %v1051_v34, %v579_v42  ;;  %v626_v34 = vmul.f32 %v530_v32, %v530_v32 }
 0x11a   : > { %v581_v49 = vadd.f32 %v580_v47, %v514_v61  ;;  %v652_v28 = vadd.f32 %v651_v46, %v621_v45 }
 0x11c   : > { %v653_v51 = vadd.f32 %v652_v28, %v622_v50  ;;  %v582_v43 = vadd.f32 %v581_v49, %v517_v15  ;;  %v632_v15 = vmul.f32 %v870_v54, %v870_v54 }
 0x11e   : > { %v583_v25 = vadd.f32 %v1053_v52, %v582_v43  ;;  %v654_v56 = vadd.f32 %v653_v51, %v623_v53  ;;  %v549_v52 = vpop.f32.mrf.mxu1 }
 0x11f   : > { %v631_v14 = vmul.f32 %v549_v52, %v549_v52 }
 0x120   : > { %v655_v58 = vadd.f32 %v654_v56, %v624_v55  ;;  %v584_v59 = vadd.f32 %v863_v6, %v583_v25 }
 0x122   : > { %v585_v62 = vadd.f32 %v584_v59, %v530_v32  ;;  %v656_v63 = vadd.f32 %v655_v58, %v625_v57 }
 0x124   : > { %v657_v0 = vadd.f32 %v656_v63, %v626_v34  ;;  %v586_v61 = vadd.f32 %v585_v62, %v533_v48 }
 0x126   : > { %v587_v4 = vadd.f32 %v866_v23, %v586_v61  ;;  %v658_v5 = vadd.f32 %v657_v0, %v627_v1 }
 0x128   : > { %v659_v8 = vadd.f32 %v658_v5, %v628_v3  ;;  %v588_v9 = vadd.f32 %v867_v40, %v587_v4 }
 0x12a   : > { %v589_v10 = vadd.f32 %v588_v9, %v546_v60  ;;  %v660_v6 = vadd.f32 %v659_v8, %v629_v7 }
 0x12c   : > { %v661_v12 = vadd.f32 %v660_v6, %v630_v11  ;;  %v590_v13 = vadd.f32 %v589_v10, %v549_v52 }
 0x12e   : > { %v591_v16 = vadd.f32 %v870_v54, %v590_v13  ;;  %v662_v17 = vadd.f32 %v661_v12, %v631_v14 }
 0x130   : > { %v592_v19 = vadd.f32 %v871_v2, %v591_v16  ;;  %v663_v20 = vadd.f32 %v662_v17, %v632_v15 }
 0x132   : > { %v593_v21 = vrot.slane %v592_v19, 4  ;;  %v664_v22 = vadd.f32 %v663_v20, %v633_v18 }
 0x134   : > { %v594_v23 = vadd.f32 %v593_v21, %v592_v19  ;;  %v665_v24 = vrot.slane %v664_v22, 4 }
 0x136   : > { %v595_v26 = vrot.slane %v594_v23, 2  ;;  %v666_v27 = vadd.f32 %v665_v24, %v664_v22 }
 0x138   : > { %v596_v29 = vadd.f32 %v595_v26, %v594_v23  ;;  %v667_v30 = vrot.slane %v666_v27, 2 }
 0x13a   : > { %v597_v31 = vrot.slane %v596_v29, 1  ;;  %v668_v32 = vadd.f32 %v667_v30, %v666_v27 }
 0x13c   : > { %v598_v33 = vadd.f32 %v597_v31, %v596_v29  ;;  %v669_v35 = vrot.slane %v668_v32, 1 }
 0x13e   : > { %v670_v36 = vadd.f32 %v669_v35, %v668_v32  ;;  %600 = vst [vmem:[%s196_s17] sm:$0xff] %v598_v33 }
 0x140   : > { %672 = vst [vmem:[%s200_s20] sm:$0xff] %v670_v36 }
 0x141 PF: > { %s14_s14 = sadd.s32 1, %s959_s14   ;;  %s1088_s12 = smov %s955_s13 }
 0x142   : > { %p11_p6 = scmp.ge.s32.totalorder %s14_s14, 4   ;;  %s1089_s13 = smov %s1091_s15 }
 0x144   :  { %13 = sbr.rel (!%p11_p6) target bundleno = 2 (0x2), region = 74 }

// kernel: res_basic_block.5
= control target key start
LH: loop header
LB: loop body
LE: loop exit
PB: predicated region body
PF: predicated region fallthrough
CT: control target
= control target key end

     0   :  { %s1230_s15 = smov 0   ;;  %s1388_s0 = inlined_call_operand.vmem [shape: bf16[512,128], index: 0, kind: input, shape index: {}]   ;;  %s1389_s1 = inlined_call_operand.vmem [shape: bf16[128,128], index: 1, kind: input, shape index: {}]   ;;  %s1390_s2 = inlined_call_operand.vmem [shape: f32[1,128], index: 2, kind: input, shape index: {}]   ;;  %s1391_s3 = inlined_call_operand.vmem [shape: f32[1,128], index: 3, kind: input, shape index: {}]   ;;  %s1392_s4 = inlined_call_operand.vmem [shape: bf16[512,128], index: 4, kind: output, shape index: {}]  }
   0x1 LB: > { %s881_s16 = sadd.s32 4294967295, %s1203_s15   ;;  %p885_p0 = scmp.ge.s32.totalorder %s1203_s15, 1  ;;  %s1203_s15 = sphi %s1230_s15, %s14_s15  }
   0x2   : > { %p163_p1 = scmp.lt.s32.totalorder %s1203_s15, 3 }
   0x4   : > { %p164_p2 = pnand %p885_p0, %p163_p1 }
   0x5   : > { %s886_s19 = sshll.u32 (!%p164_p2), %s881_s16, 5 }
   0x6   : > { %167 = sbr.rel (%p164_p2) target bundleno = 276 (0x114), region = 36  ;;  %p190_p3 = scmp.lt.s32.totalorder (!%p164_p2), %s886_s19, 63 }
   0xb   : > { %v1173_v0 = vld [vmem:[%s1389_s1 + $0x38] sm:$0xff]   ;;  %v1174_v1 = vld [vmem:[%s1389_s1 + $0x30] sm:$0xff]   ;;  %s1394_s19 = smov (!%p190_p3, %s886_s19), 63  ;;  %v1175_v2 = vld [vmem:[%s1389_s1 + $0x28] sm:$0xff]  }
   0xc   : > { %1101 = vmatprep.subr.bf16.mxu0 %v1173_v0  ;;  %1149 = vmatprep.subr.bf16.mxu1 %v1173_v0  ;;  %s887_s24 = sshll.u32 %s1394_s19, 2  ;;  %v1176_v3 = vld [vmem:[%s1389_s1 + $0x20] sm:$0xff]   ;;  %v1177_v6 = vld [vmem:[%s1389_s1 + $0x18] sm:$0xff]   ;;  %v1178_v7 = vld [vmem:[%s1389_s1 + $0x10] sm:$0xff]  }
   0xd   : > { %1102 = vmatpush3.bf16.msra.mxu0 %v1173_v0  ;;  %1157 = vmatpush3.bf16.msra.mxu1 %v1173_v0  ;;  %s1255_s27 = scalar_lea.vmem %s1388_s0, %s887_s24  ;;  %v1179_v8 = vld [vmem:[%s1389_s1 + $0x8] sm:$0xff]   ;;  %v1180_v9 = vld [vmem:[%s1389_s1] sm:$0xff]   ;;  %s1321_s20 = scalar_lea.vmem %s1392_s4, %s887_s24 }
   0xe   : > { %1103 = vmatprep.subr.bf16.mxu0 %v1174_v1  ;;  %1150 = vmatprep.subr.bf16.mxu1 %v1174_v1  ;;  %v1181_v4 = vld [vmem:[%s1255_s27] sm:$0xff]   ;;  %v1183_v10 = vld [vmem:[%s1255_s27 + $0x8] sm:$0xff]   ;;  %v1185_v12 = vld [vmem:[%s1255_s27 + $0x10] sm:$0xff]  }
   0xf   : > { %v1182_v5 = vld [vmem:[%s1255_s27 + $0x40] sm:$0xff]   ;;  %1117 = vmatprep.mubr.bf16.mxu0 %v1181_v4  ;;  %v1184_v11 = vld [vmem:[%s1255_s27 + $0x48] sm:$0xff]   ;;  %v1186_v13 = vld [vmem:[%s1255_s27 + $0x50] sm:$0xff]  }
  0x10   : > { %1133 = vmatprep.mubr.bf16.mxu1 %v1182_v5  ;;  %v1187_v14 = vld [vmem:[%s1255_s27 + $0x18] sm:$0xff]   ;;  %v1189_v16 = vld [vmem:[%s1255_s27 + $0x20] sm:$0xff]   ;;  %v1191_v18 = vld [vmem:[%s1255_s27 + $0x28] sm:$0xff]  }
  0x11   : > { %1104 = vmatpush3.bf16.msra.mxu0 %v1174_v1  ;;  %1158 = vmatpush3.bf16.msra.mxu1 %v1174_v1  ;;  %v1188_v15 = vld [vmem:[%s1255_s27 + $0x58] sm:$0xff]   ;;  %v1190_v17 = vld [vmem:[%s1255_s27 + $0x60] sm:$0xff]   ;;  %v1192_v19 = vld [vmem:[%s1255_s27 + $0x68] sm:$0xff]  }
  0x12   : > { %1105 = vmatprep.subr.bf16.mxu0 %v1175_v2  ;;  %1151 = vmatprep.subr.bf16.mxu1 %v1175_v2  ;;  %v1193_v20 = vld [vmem:[%s1255_s27 + $0x30] sm:$0xff]   ;;  %v1195_v22 = vld [vmem:[%s1255_s27 + $0x38] sm:$0xff]   ;;  %v1291_v24 = vld [vmem:[%s1390_s2] ss:$0 sm:$0xff] }
  0x13   : > { %v1194_v21 = vld [vmem:[%s1255_s27 + $0x70] sm:$0xff]   ;;  %v1196_v23 = vld [vmem:[%s1255_s27 + $0x78] sm:$0xff]   ;;  %v1298_v29 = vld [vmem:[%s1391_s3] ss:$0 sm:$0xff] }
  0x15   : > { %1106 = vmatpush3.bf16.msra.mxu0 %v1175_v2  ;;  %1159 = vmatpush3.bf16.msra.mxu1 %v1175_v2 }
  0x16   : > { %1107 = vmatprep.subr.bf16.mxu0 %v1176_v3  ;;  %1152 = vmatprep.subr.bf16.mxu1 %v1176_v3 }
  0x19   : > { %1108 = vmatpush3.bf16.msra.mxu0 %v1176_v3  ;;  %1160 = vmatpush3.bf16.msra.mxu1 %v1176_v3 }
  0x1a   : > { %1109 = vmatprep.subr.bf16.mxu0 %v1177_v6  ;;  %1153 = vmatprep.subr.bf16.mxu1 %v1177_v6 }
  0x1d   : > { %1110 = vmatpush3.bf16.msra.mxu0 %v1177_v6  ;;  %1161 = vmatpush3.bf16.msra.mxu1 %v1177_v6 }
  0x1e   : > { %1111 = vmatprep.subr.bf16.mxu0 %v1178_v7  ;;  %1154 = vmatprep.subr.bf16.mxu1 %v1178_v7 }
  0x21   : > { %1112 = vmatpush3.bf16.msra.mxu0 %v1178_v7  ;;  %1162 = vmatpush3.bf16.msra.mxu1 %v1178_v7 }
  0x22   : > { %1113 = vmatprep.subr.bf16.mxu0 %v1179_v8  ;;  %1155 = vmatprep.subr.bf16.mxu1 %v1179_v8 }
  0x25   : > { %1114 = vmatpush3.bf16.msra.mxu0 %v1179_v8  ;;  %1163 = vmatpush3.bf16.msra.mxu1 %v1179_v8 }
  0x26   : > { %1115 = vmatprep.subr.bf16.mxu0 %v1180_v9  ;;  %1156 = vmatprep.subr.bf16.mxu1 %v1180_v9 }
  0x29   : > { %1116 = vmatpush3.bf16.msra.mxu0 %v1180_v9  ;;  %1164 = vmatpush3.bf16.msra.mxu1 %v1180_v9 }
  0x2c   : > { %1118 = vmatmul.mubr.bf16.vlgmr.msra.gmra.mxu0 %v1183_v10  ;;  %1134 = vmatmul.mubr.bf16.vlgmr.msra.gmra.mxu1 %v1184_v11 }
  0x2d   : > { %1121 = vmatprep.mubr.bf16.mxu0 %v1185_v12  ;;  %1137 = vmatprep.mubr.bf16.mxu1 %v1186_v13 }
  0x34   : > { %1122 = vmatmul.mubr.bf16.gmra.mxu0 %v1187_v14  ;;  %1138 = vmatmul.mubr.bf16.gmra.mxu1 %v1188_v15 }
  0x35   : > { %1125 = vmatprep.mubr.bf16.mxu0 %v1189_v16  ;;  %1141 = vmatprep.mubr.bf16.mxu1 %v1190_v17 }
  0x3c   : > { %1126 = vmatmul.mubr.bf16.gmra.mxu0 %v1191_v18  ;;  %1142 = vmatmul.mubr.bf16.gmra.mxu1 %v1192_v19 }
  0x3d   : > { %1129 = vmatprep.mubr.bf16.mxu0 %v1193_v20  ;;  %1145 = vmatprep.mubr.bf16.mxu1 %v1194_v21 }
  0x44   : > { %1130 = vmatmul.mubr.bf16.gmra.mxu0 %v1195_v22  ;;  %1146 = vmatmul.mubr.bf16.gmra.mxu1 %v1196_v23 }
  0xec   : > { %v1119_v25 = vpop.f32.mrf.mxu0  ;;  %v1135_v26 = vpop.f32.mrf.mxu1 }
  0xed   : > { %v564_v27 = vmul.f32 %v1119_v25, %v1291_v24  ;;  %v580_v28 = vmul.f32 %v1135_v26, %v1291_v24 }
  0xee   : > { %v428_v30 = vpop.f32.mrf.mxu0  ;;  %v492_v31 = vpop.f32.mrf.mxu1 }
  0xef   : > { %v562_v32 = vmul.f32 %v1291_v24, %v428_v30  ;;  %v578_v33 = vmul.f32 %v1291_v24, %v492_v31  ;;  %v603_v36 = vadd.f32 %v1298_v29, %v564_v27  ;;  %v619_v37 = vadd.f32 %v1298_v29, %v580_v28 }
  0xf0   : > { %v1120_v34 = vpop.f32.mrf.mxu0  ;;  %v1136_v35 = vpop.f32.mrf.mxu1 }
  0xf1   : > { %v565_v38 = vmul.f32 %v1120_v34, %v1291_v24  ;;  %v581_v39 = vmul.f32 %v1136_v35, %v1291_v24  ;;  %v601_v42 = vadd.f32 %v1298_v29, %v562_v32  ;;  %v617_v43 = vadd.f32 %v1298_v29, %v578_v33 }
  0xf2   : > { %v431_v40 = vpop.f32.mrf.mxu0  ;;  %v495_v41 = vpop.f32.mrf.mxu1  ;;  %v635_v50 = vmax.f32 %v603_v36, 0.0  ;;  %v651_v51 = vmax.f32 %v619_v37, 0.0 }
  0xf3   : > { %v563_v44 = vmul.f32 %v1291_v24, %v431_v40  ;;  %v579_v45 = vmul.f32 %v1291_v24, %v495_v41  ;;  %v604_v46 = vadd.f32 %v1298_v29, %v565_v38  ;;  %v620_v47 = vadd.f32 %v1298_v29, %v581_v39 }
  0xf4   : > { %v1123_v48 = vpop.f32.mrf.mxu0  ;;  %v1139_v49 = vpop.f32.mrf.mxu1  ;;  %v633_v60 = vmax.f32 %v601_v42, 0.0  ;;  %v649_v61 = vmax.f32 %v617_v43, 0.0 }
  0xf5   : > { %v602_v52 = vadd.f32 %v1298_v29, %v563_v44  ;;  %v618_v53 = vadd.f32 %v1298_v29, %v579_v45  ;;  %v636_v54 = vmax.f32 %v604_v46, 0.0  ;;  %v652_v55 = vmax.f32 %v620_v47, 0.0 }
  0xf6   : > { %v568_v56 = vmul.f32 %v1123_v48, %v1291_v24  ;;  %v584_v57 = vmul.f32 %v1139_v49, %v1291_v24  ;;  %v444_v58 = vpop.f32.mrf.mxu0  ;;  %v508_v59 = vpop.f32.mrf.mxu1 }
  0xf7   : > { %v634_v62 = vmax.f32 %v602_v52, 0.0  ;;  %v650_v63 = vmax.f32 %v618_v53, 0.0  ;;  %v990_v0 = vpack.c.bf16 %v636_v54, %v635_v50  ;;  %v1030_v1 = vpack.c.bf16 %v652_v55, %v651_v51 }
  0xf8   : > { %v566_v2 = vmul.f32 %v1291_v24, %v444_v58  ;;  %v582_v3 = vmul.f32 %v1291_v24, %v508_v59  ;;  %v1124_v4 = vpop.f32.mrf.mxu0  ;;  %v1140_v5 = vpop.f32.mrf.mxu1  ;;  %v607_v8 = vadd.f32 %v1298_v29, %v568_v56  ;;  %v623_v9 = vadd.f32 %v1298_v29, %v584_v57 }
  0xf9   : > { %v985_v6 = vpack.c.bf16 %v634_v62, %v633_v60  ;;  %v1025_v7 = vpack.c.bf16 %v650_v63, %v649_v61  ;;  %1062 = vst [vmem:[%s1321_s20 + $0x8] sm:$0xff] %v990_v0   ;;  %1070 = vst [vmem:[%s1321_s20 + $0x48] sm:$0xff] %v1030_v1   ;;  %v569_v10 = vmul.f32 %v1124_v4, %v1291_v24 }
  0xfa   : > { %v585_v11 = vmul.f32 %v1140_v5, %v1291_v24  ;;  %v447_v12 = vpop.f32.mrf.mxu0  ;;  %v511_v13 = vpop.f32.mrf.mxu1  ;;  %v605_v14 = vadd.f32 %v1298_v29, %v566_v2  ;;  %v621_v15 = vadd.f32 %v1298_v29, %v582_v3  ;;  %v639_v27 = vmax.f32 %v607_v8, 0.0 }
  0xfb   : > { %986 = vst [vmem:[%s1321_s20] sm:$0xff] %v985_v6   ;;  %1069 = vst [vmem:[%s1321_s20 + $0x40] sm:$0xff] %v1025_v7   ;;  %v567_v16 = vmul.f32 %v1291_v24, %v447_v12  ;;  %v583_v17 = vmul.f32 %v1291_v24, %v511_v13  ;;  %v608_v18 = vadd.f32 %v1298_v29, %v569_v10  ;;  %v655_v28 = vmax.f32 %v623_v9, 0.0 }
  0xfc   : > { %v624_v19 = vadd.f32 %v1298_v29, %v585_v11  ;;  %v1127_v20 = vpop.f32.mrf.mxu0  ;;  %v1143_v21 = vpop.f32.mrf.mxu1  ;;  %v637_v34 = vmax.f32 %v605_v14, 0.0  ;;  %v653_v35 = vmax.f32 %v621_v15, 0.0 }
  0xfd   : > { %v606_v22 = vadd.f32 %v1298_v29, %v567_v16  ;;  %v622_v23 = vadd.f32 %v1298_v29, %v583_v17  ;;  %v572_v25 = vmul.f32 %v1127_v20, %v1291_v24  ;;  %v588_v26 = vmul.f32 %v1143_v21, %v1291_v24 }
  0xfe   : > { %v640_v30 = vmax.f32 %v608_v18, 0.0  ;;  %v656_v31 = vmax.f32 %v624_v19, 0.0  ;;  %v460_v32 = vpop.f32.mrf.mxu0  ;;  %v524_v33 = vpop.f32.mrf.mxu1 }
  0xff   : > { %v638_v36 = vmax.f32 %v606_v22, 0.0  ;;  %v654_v37 = vmax.f32 %v622_v23, 0.0  ;;  %v570_v40 = vmul.f32 %v1291_v24, %v460_v32  ;;  %v586_v41 = vmul.f32 %v1291_v24, %v524_v33 }
 0x100   : > { %v1000_v38 = vpack.c.bf16 %v640_v30, %v639_v27  ;;  %v1040_v39 = vpack.c.bf16 %v656_v31, %v655_v28  ;;  %v1128_v42 = vpop.f32.mrf.mxu0  ;;  %v1144_v43 = vpop.f32.mrf.mxu1  ;;  %v611_v46 = vadd.f32 %v1298_v29, %v572_v25  ;;  %v627_v47 = vadd.f32 %v1298_v29, %v588_v26 }
 0x101   : > { %v995_v44 = vpack.c.bf16 %v638_v36, %v637_v34  ;;  %v1035_v45 = vpack.c.bf16 %v654_v37, %v653_v35  ;;  %v573_v48 = vmul.f32 %v1128_v42, %v1291_v24  ;;  %v589_v49 = vmul.f32 %v1144_v43, %v1291_v24 }
 0x102   : > { %1064 = vst [vmem:[%s1321_s20 + $0x18] sm:$0xff] %v1000_v38   ;;  %1072 = vst [vmem:[%s1321_s20 + $0x58] sm:$0xff] %v1040_v39   ;;  %v463_v50 = vpop.f32.mrf.mxu0  ;;  %v527_v51 = vpop.f32.mrf.mxu1  ;;  %v609_v52 = vadd.f32 %v1298_v29, %v570_v40  ;;  %v625_v53 = vadd.f32 %v1298_v29, %v586_v41  ;;  %v643_v60 = vmax.f32 %v611_v46, 0.0  ;;  %v659_v61 = vmax.f32 %v627_v47, 0.0 }
 0x103   : > { %1063 = vst [vmem:[%s1321_s20 + $0x10] sm:$0xff] %v995_v44   ;;  %1071 = vst [vmem:[%s1321_s20 + $0x50] sm:$0xff] %v1035_v45   ;;  %v571_v54 = vmul.f32 %v1291_v24, %v463_v50  ;;  %v587_v55 = vmul.f32 %v1291_v24, %v527_v51  ;;  %v612_v56 = vadd.f32 %v1298_v29, %v573_v48 }
 0x104   : > { %v628_v57 = vadd.f32 %v1298_v29, %v589_v49  ;;  %v1131_v58 = vpop.f32.mrf.mxu0  ;;  %v1147_v59 = vpop.f32.mrf.mxu1  ;;  %v641_v6 = vmax.f32 %v609_v52, 0.0  ;;  %v657_v7 = vmax.f32 %v625_v53, 0.0 }
 0x105   : > { %v610_v62 = vadd.f32 %v1298_v29, %v571_v54  ;;  %v626_v63 = vadd.f32 %v1298_v29, %v587_v55  ;;  %v644_v0 = vmax.f32 %v612_v56, 0.0  ;;  %v576_v2 = vmul.f32 %v1131_v58, %v1291_v24 }
 0x106   : > { %v660_v1 = vmax.f32 %v628_v57, 0.0  ;;  %v592_v3 = vmul.f32 %v1147_v59, %v1291_v24  ;;  %v476_v4 = vpop.f32.mrf.mxu0  ;;  %v540_v5 = vpop.f32.mrf.mxu1 }
 0x107   : > { %v642_v8 = vmax.f32 %v610_v62, 0.0  ;;  %v658_v9 = vmax.f32 %v626_v63, 0.0  ;;  %v1010_v10 = vpack.c.bf16 %v644_v0, %v643_v60  ;;  %v574_v12 = vmul.f32 %v1291_v24, %v476_v4 }
 0x108   : > { %v1050_v11 = vpack.c.bf16 %v660_v1, %v659_v61  ;;  %v590_v13 = vmul.f32 %v1291_v24, %v540_v5  ;;  %v1132_v14 = vpop.f32.mrf.mxu0  ;;  %v1148_v15 = vpop.f32.mrf.mxu1  ;;  %v615_v18 = vadd.f32 %v1298_v29, %v576_v2  ;;  %v631_v19 = vadd.f32 %v1298_v29, %v592_v3 }
 0x109   : > { %v1005_v16 = vpack.c.bf16 %v642_v8, %v641_v6  ;;  %v1045_v17 = vpack.c.bf16 %v658_v9, %v657_v7  ;;  %1066 = vst [vmem:[%s1321_s20 + $0x28] sm:$0xff] %v1010_v10   ;;  %v577_v20 = vmul.f32 %v1132_v14, %v1291_v24  ;;  %v593_v21 = vmul.f32 %v1148_v15, %v1291_v24 }
 0x10a   : > { %1074 = vst [vmem:[%s1321_s20 + $0x68] sm:$0xff] %v1050_v11   ;;  %v479_v22 = vpop.f32.mrf.mxu0  ;;  %v543_v23 = vpop.f32.mrf.mxu1  ;;  %v613_v25 = vadd.f32 %v1298_v29, %v574_v12  ;;  %v629_v26 = vadd.f32 %v1298_v29, %v590_v13  ;;  %v647_v34 = vmax.f32 %v615_v18, 0.0  ;;  %v663_v35 = vmax.f32 %v631_v19, 0.0 }
 0x10b   : > { %1065 = vst [vmem:[%s1321_s20 + $0x20] sm:$0xff] %v1005_v16   ;;  %1073 = vst [vmem:[%s1321_s20 + $0x60] sm:$0xff] %v1045_v17   ;;  %v575_v27 = vmul.f32 %v1291_v24, %v479_v22  ;;  %v591_v28 = vmul.f32 %v1291_v24, %v543_v23  ;;  %v616_v30 = vadd.f32 %v1298_v29, %v577_v20 }
 0x10c   : > { %v632_v31 = vadd.f32 %v1298_v29, %v593_v21  ;;  %v645_v38 = vmax.f32 %v613_v25, 0.0  ;;  %v661_v39 = vmax.f32 %v629_v26, 0.0 }
 0x10d   : > { %v614_v32 = vadd.f32 %v1298_v29, %v575_v27  ;;  %v630_v33 = vadd.f32 %v1298_v29, %v591_v28  ;;  %v648_v36 = vmax.f32 %v616_v30, 0.0 }
 0x10e   : > { %v664_v37 = vmax.f32 %v632_v31, 0.0 }
 0x10f   : > { %v646_v40 = vmax.f32 %v614_v32, 0.0  ;;  %v662_v24 = vmax.f32 %v630_v33, 0.0  ;;  %v1020_v41 = vpack.c.bf16 %v648_v36, %v647_v34 }
 0x110   : > { %v1060_v42 = vpack.c.bf16 %v664_v37, %v663_v35 }
 0x111   : > { %v1015_v43 = vpack.c.bf16 %v646_v40, %v645_v38  ;;  %v1055_v44 = vpack.c.bf16 %v662_v24, %v661_v39  ;;  %1068 = vst [vmem:[%s1321_s20 + $0x38] sm:$0xff] %v1020_v41  }
 0x112   : > { %1076 = vst [vmem:[%s1321_s20 + $0x78] sm:$0xff] %v1060_v42  }
 0x113   : > { %1067 = vst [vmem:[%s1321_s20 + $0x30] sm:$0xff] %v1015_v43   ;;  %1075 = vst [vmem:[%s1321_s20 + $0x70] sm:$0xff] %v1055_v44  }
 0x114 PF: > { %s14_s15 = sadd.s32 1, %s1203_s15  }
 0x115   : > { %p11_p4 = scmp.ge.s32.totalorder %s14_s15, 4  }
 0x117   :  { %13 = sbr.rel (!%p11_p4) target bundleno = 1 (0x1), region = 66 }

// kernel: res_basic_block.7
= control target key start
LH: loop header
LB: loop body
LE: loop exit
PB: predicated region body
PF: predicated region fallthrough
CT: control target
= control target key end

     0   :  { %s1186_s18 = smov 0   ;;  %s1506_s0 = inlined_call_operand.vmem [shape: bf16[512,128], index: 0, kind: input, shape index: {}]   ;;  %s1507_s1 = inlined_call_operand.vmem [shape: bf16[128,128], index: 1, kind: input, shape index: {}]   ;;  %s1508_s2 = inlined_call_operand.vmem [shape: f32[1,128], index: 2, kind: input, shape index: {}]   ;;  %s1509_s3 = inlined_call_operand.vmem [shape: f32[1,128], index: 3, kind: input, shape index: {}]   ;;  %s1510_s4 = inlined_call_operand.vmem [shape: bf16[512,128], index: 4, kind: input, shape index: {}]   ;;  %s1511_s5 = inlined_call_operand.vmem [shape: f32[512,128], index: 5, kind: output, shape index: {}]  }
   0x1 LB: > { %s910_s19 = sadd.s32 4294967295, %s1154_s18   ;;  %p914_p0 = scmp.ge.s32.totalorder %s1154_s18, 1  ;;  %s1154_s18 = sphi %s1186_s18, %s15_s18  }
   0x2   : > { %p199_p1 = scmp.lt.s32.totalorder %s1154_s18, 3 }
   0x4   : > { %p200_p2 = pnand %p914_p0, %p199_p1 }
   0x5   : > { %s915_s22 = sshll.u32 (!%p200_p2), %s910_s19, 5 }
   0x6   : > { %203 = sbr.rel (%p200_p2) target bundleno = 278 (0x116), region = 40  ;;  %p233_p3 = scmp.lt.s32.totalorder (!%p200_p2), %s915_s22, 63 }
   0xb   : > { %v1124_v0 = vld [vmem:[%s1507_s1 + $0x38] sm:$0xff]   ;;  %v1125_v1 = vld [vmem:[%s1507_s1 + $0x30] sm:$0xff]   ;;  %s1515_s22 = smov (!%p233_p3, %s915_s22), 63  ;;  %v1126_v2 = vld [vmem:[%s1507_s1 + $0x28] sm:$0xff]  }
   0xc   : > { %1052 = vmatprep.subr.bf16.mxu0 %v1124_v0  ;;  %1100 = vmatprep.subr.bf16.mxu1 %v1124_v0  ;;  %s916_s27 = sshll.u32 %s1515_s22, 2  ;;  %v1127_v3 = vld [vmem:[%s1507_s1 + $0x20] sm:$0xff]   ;;  %v1128_v6 = vld [vmem:[%s1507_s1 + $0x18] sm:$0xff]   ;;  %v1129_v7 = vld [vmem:[%s1507_s1 + $0x10] sm:$0xff]   ;;  %s920_s25 = sshll.u32 %s1515_s22, 3 }
   0xd   : > { %1053 = vmatpush3.bf16.msra.mxu0 %v1124_v0  ;;  %1108 = vmatpush3.bf16.msra.mxu1 %v1124_v0  ;;  %s1211_s30 = scalar_lea.vmem %s1506_s0, %s916_s27  ;;  %v1130_v8 = vld [vmem:[%s1507_s1 + $0x8] sm:$0xff]   ;;  %v1131_v9 = vld [vmem:[%s1507_s1] sm:$0xff]   ;;  %s1249_s19 = scalar_lea.vmem %s1510_s4, %s916_s27 }
   0xe   : > { %1054 = vmatprep.subr.bf16.mxu0 %v1125_v1  ;;  %1101 = vmatprep.subr.bf16.mxu1 %v1125_v1  ;;  %v1132_v4 = vld [vmem:[%s1211_s30] sm:$0xff]   ;;  %v1134_v10 = vld [vmem:[%s1211_s30 + $0x8] sm:$0xff]   ;;  %v1136_v12 = vld [vmem:[%s1211_s30 + $0x10] sm:$0xff]   ;;  %s1351_s27 = scalar_lea.vmem %s1511_s5, %s920_s25 }
   0xf   : > { %v1133_v5 = vld [vmem:[%s1211_s30 + $0x40] sm:$0xff]   ;;  %1068 = vmatprep.mubr.bf16.mxu0 %v1132_v4  ;;  %v1135_v11 = vld [vmem:[%s1211_s30 + $0x48] sm:$0xff]   ;;  %v1137_v13 = vld [vmem:[%s1211_s30 + $0x50] sm:$0xff]  }
  0x10   : > { %1084 = vmatprep.mubr.bf16.mxu1 %v1133_v5  ;;  %v1138_v14 = vld [vmem:[%s1211_s30 + $0x18] sm:$0xff]   ;;  %v1140_v16 = vld [vmem:[%s1211_s30 + $0x20] sm:$0xff]   ;;  %v1142_v18 = vld [vmem:[%s1211_s30 + $0x28] sm:$0xff]  }
  0x11   : > { %1055 = vmatpush3.bf16.msra.mxu0 %v1125_v1  ;;  %1109 = vmatpush3.bf16.msra.mxu1 %v1125_v1  ;;  %v1139_v15 = vld [vmem:[%s1211_s30 + $0x58] sm:$0xff]   ;;  %v1141_v17 = vld [vmem:[%s1211_s30 + $0x60] sm:$0xff]   ;;  %v1143_v19 = vld [vmem:[%s1211_s30 + $0x68] sm:$0xff]  }
  0x12   : > { %1056 = vmatprep.subr.bf16.mxu0 %v1126_v2  ;;  %1102 = vmatprep.subr.bf16.mxu1 %v1126_v2  ;;  %v1144_v20 = vld [vmem:[%s1211_s30 + $0x30] sm:$0xff]   ;;  %v1146_v22 = vld [vmem:[%s1211_s30 + $0x38] sm:$0xff]   ;;  %v1252_v24 = vld [vmem:[%s1249_s19 + $0x8] sm:$0xff]  }
  0x13   : > { %v1145_v21 = vld [vmem:[%s1211_s30 + $0x70] sm:$0xff]   ;;  %v1147_v23 = vld [vmem:[%s1211_s30 + $0x78] sm:$0xff]   ;;  %v1255_v25 = vld [vmem:[%s1249_s19 + $0x48] sm:$0xff]   ;;  %v955_v32 = vunpack.c.l.bf16 %v1252_v24  ;;  %v956_v37 = vunpack.c.h.bf16 %v1252_v24 }
  0x14   : > { %v1258_v26 = vld [vmem:[%s1249_s19] sm:$0xff]   ;;  %v1264_v28 = vld [vmem:[%s1249_s19 + $0x18] sm:$0xff]   ;;  %v1270_v30 = vld [vmem:[%s1249_s19 + $0x10] sm:$0xff]   ;;  %v987_v33 = vunpack.c.l.bf16 %v1255_v25  ;;  %v988_v38 = vunpack.c.h.bf16 %v1255_v25 }
  0x15   : > { %1057 = vmatpush3.bf16.msra.mxu0 %v1126_v2  ;;  %1110 = vmatpush3.bf16.msra.mxu1 %v1126_v2  ;;  %v1261_v27 = vld [vmem:[%s1249_s19 + $0x40] sm:$0xff]   ;;  %v1267_v29 = vld [vmem:[%s1249_s19 + $0x58] sm:$0xff]   ;;  %v1273_v31 = vld [vmem:[%s1249_s19 + $0x50] sm:$0xff]   ;;  %v951_v34 = vunpack.c.l.bf16 %v1258_v26  ;;  %v952_v39 = vunpack.c.h.bf16 %v1258_v26  ;;  %v963_v45 = vunpack.c.l.bf16 %v1264_v28  ;;  %v959_v47 = vunpack.c.l.bf16 %v1270_v30 }
  0x16   : > { %1058 = vmatprep.subr.bf16.mxu0 %v1127_v3  ;;  %1103 = vmatprep.subr.bf16.mxu1 %v1127_v3  ;;  %v983_v35 = vunpack.c.l.bf16 %v1261_v27  ;;  %v1280_v36 = vld [vmem:[%s1249_s19 + $0x28] sm:$0xff]   ;;  %v984_v40 = vunpack.c.h.bf16 %v1261_v27  ;;  %v1290_v42 = vld [vmem:[%s1249_s19 + $0x20] sm:$0xff]   ;;  %v995_v46 = vunpack.c.l.bf16 %v1267_v29  ;;  %v991_v48 = vunpack.c.l.bf16 %v1273_v31  ;;  %v1309_v53 = vld [vmem:[%s1249_s19 + $0x38] sm:$0xff]  }
  0x17   : > { %v1287_v41 = vld [vmem:[%s1249_s19 + $0x68] sm:$0xff]   ;;  %v1293_v43 = vld [vmem:[%s1249_s19 + $0x60] sm:$0xff]   ;;  %v964_v49 = vunpack.c.h.bf16 %v1264_v28  ;;  %v996_v50 = vunpack.c.h.bf16 %v1267_v29  ;;  %v960_v51 = vunpack.c.h.bf16 %v1270_v30  ;;  %v992_v52 = vunpack.c.h.bf16 %v1273_v31  ;;  %v1312_v54 = vld [vmem:[%s1249_s19 + $0x78] sm:$0xff]  }
  0x18   : > { %v1298_v44 = vld [vmem:[%s1508_s2] ss:$0 sm:$0xff]  ;;  %v971_v58 = vunpack.c.l.bf16 %v1280_v36  ;;  %v1003_v59 = vunpack.c.l.bf16 %v1287_v41  ;;  %v967_v60 = vunpack.c.l.bf16 %v1290_v42  ;;  %v999_v61 = vunpack.c.l.bf16 %v1293_v43  ;;  %v1328_v2 = vld [vmem:[%s1249_s19 + $0x30] sm:$0xff]  }
  0x19   : > { %1059 = vmatpush3.bf16.msra.mxu0 %v1127_v3  ;;  %1111 = vmatpush3.bf16.msra.mxu1 %v1127_v3  ;;  %v1317_v56 = vld [vmem:[%s1509_s3] ss:$0 sm:$0xff]  ;;  %v972_v0 = vunpack.c.h.bf16 %v1280_v36  ;;  %v1004_v1 = vunpack.c.h.bf16 %v1287_v41  ;;  %v1331_v3 = vld [vmem:[%s1249_s19 + $0x70] sm:$0xff]  }
  0x1a   : > { %1060 = vmatprep.subr.bf16.mxu0 %v1128_v6  ;;  %1104 = vmatprep.subr.bf16.mxu1 %v1128_v6 }
  0x1d   : > { %1061 = vmatpush3.bf16.msra.mxu0 %v1128_v6  ;;  %1112 = vmatpush3.bf16.msra.mxu1 %v1128_v6  ;;  %v968_v6 = vunpack.c.h.bf16 %v1290_v42 }
  0x1e   : > { %1062 = vmatprep.subr.bf16.mxu0 %v1129_v7  ;;  %1105 = vmatprep.subr.bf16.mxu1 %v1129_v7 }
  0x21   : > { %1063 = vmatpush3.bf16.msra.mxu0 %v1129_v7  ;;  %1113 = vmatpush3.bf16.msra.mxu1 %v1129_v7  ;;  %v1000_v7 = vunpack.c.h.bf16 %v1293_v43 }
  0x22   : > { %1064 = vmatprep.subr.bf16.mxu0 %v1130_v8  ;;  %1106 = vmatprep.subr.bf16.mxu1 %v1130_v8 }
  0x25   : > { %1065 = vmatpush3.bf16.msra.mxu0 %v1130_v8  ;;  %1114 = vmatpush3.bf16.msra.mxu1 %v1130_v8  ;;  %v979_v8 = vunpack.c.l.bf16 %v1309_v53 }
  0x26   : > { %1066 = vmatprep.subr.bf16.mxu0 %v1131_v9  ;;  %1107 = vmatprep.subr.bf16.mxu1 %v1131_v9 }
  0x29   : > { %1067 = vmatpush3.bf16.msra.mxu0 %v1131_v9  ;;  %1115 = vmatpush3.bf16.msra.mxu1 %v1131_v9  ;;  %v1011_v9 = vunpack.c.l.bf16 %v1312_v54 }
  0x2c   : > { %1069 = vmatmul.mubr.bf16.vlgmr.msra.gmra.mxu0 %v1134_v10  ;;  %1085 = vmatmul.mubr.bf16.vlgmr.msra.gmra.mxu1 %v1135_v11 }
  0x2d   : > { %1072 = vmatprep.mubr.bf16.mxu0 %v1136_v12  ;;  %1088 = vmatprep.mubr.bf16.mxu1 %v1137_v13 }
  0x34   : > { %1073 = vmatmul.mubr.bf16.gmra.mxu0 %v1138_v14  ;;  %1089 = vmatmul.mubr.bf16.gmra.mxu1 %v1139_v15 }
  0x35   : > { %1076 = vmatprep.mubr.bf16.mxu0 %v1140_v16  ;;  %1092 = vmatprep.mubr.bf16.mxu1 %v1141_v17  ;;  %v975_v16 = vunpack.c.l.bf16 %v1328_v2  ;;  %v1007_v17 = vunpack.c.l.bf16 %v1331_v3 }
  0x3c   : > { %1077 = vmatmul.mubr.bf16.gmra.mxu0 %v1142_v18  ;;  %1093 = vmatmul.mubr.bf16.gmra.mxu1 %v1143_v19  ;;  %v980_v18 = vunpack.c.h.bf16 %v1309_v53  ;;  %v1012_v19 = vunpack.c.h.bf16 %v1312_v54 }
  0x3d   : > { %1080 = vmatprep.mubr.bf16.mxu0 %v1144_v20  ;;  %1096 = vmatprep.mubr.bf16.mxu1 %v1145_v21 }
  0x44   : > { %1081 = vmatmul.mubr.bf16.gmra.mxu0 %v1146_v22  ;;  %1097 = vmatmul.mubr.bf16.gmra.mxu1 %v1147_v23 }
  0xec   : > { %v1070_v55 = vpop.f32.mrf.mxu0  ;;  %v1086_v57 = vpop.f32.mrf.mxu1 }
  0xed   : > { %v613_v62 = vmul.f32 %v1070_v55, %v1298_v44  ;;  %v629_v63 = vmul.f32 %v1086_v57, %v1298_v44 }
  0xee   : > { %v477_v4 = vpop.f32.mrf.mxu0  ;;  %v541_v5 = vpop.f32.mrf.mxu1 }
  0xef   : > { %v652_v10 = vadd.f32 %v1317_v56, %v613_v62  ;;  %v668_v11 = vadd.f32 %v1317_v56, %v629_v63  ;;  %v611_v12 = vmul.f32 %v1298_v44, %v477_v4  ;;  %v627_v13 = vmul.f32 %v1298_v44, %v541_v5 }
  0xf0   : > { %v1071_v14 = vpop.f32.mrf.mxu0  ;;  %v1087_v15 = vpop.f32.mrf.mxu1 }
  0xf1   : > { %v748_v20 = vadd.f32 %v955_v32, %v652_v10  ;;  %v764_v21 = vadd.f32 %v987_v33, %v668_v11  ;;  %v650_v22 = vadd.f32 %v1317_v56, %v611_v12  ;;  %v666_v23 = vadd.f32 %v1317_v56, %v627_v13 }
  0xf2   : > { %v614_v55 = vmul.f32 %v1071_v14, %v1298_v44  ;;  %v630_v57 = vmul.f32 %v1087_v15, %v1298_v44  ;;  %v480_v62 = vpop.f32.mrf.mxu0  ;;  %v544_v63 = vpop.f32.mrf.mxu1 }
  0xf3   : > { %v780_v4 = vmax.f32 %v748_v20, 0.0  ;;  %v796_v5 = vmax.f32 %v764_v21, 0.0  ;;  %v746_v10 = vadd.f32 %v951_v34, %v650_v22  ;;  %v762_v11 = vadd.f32 %v983_v35, %v666_v23 }
  0xf4   : > { %v653_v12 = vadd.f32 %v1317_v56, %v614_v55  ;;  %v669_v13 = vadd.f32 %v1317_v56, %v630_v57  ;;  %v612_v14 = vmul.f32 %v1298_v44, %v480_v62  ;;  %v628_v15 = vmul.f32 %v1298_v44, %v544_v63  ;;  %v1074_v32 = vpop.f32.mrf.mxu0  ;;  %v1090_v33 = vpop.f32.mrf.mxu1 }
  0xf5   : > { %812 = vst [vmem:[%s1351_s27 + $0x10] sm:$0xff] %v780_v4  ;;  %828 = vst [vmem:[%s1351_s27 + $0x90] sm:$0xff] %v796_v5  ;;  %v778_v20 = vmax.f32 %v746_v10, 0.0  ;;  %v794_v21 = vmax.f32 %v762_v11, 0.0  ;;  %v617_v34 = vmul.f32 %v1074_v32, %v1298_v44  ;;  %v633_v35 = vmul.f32 %v1090_v33, %v1298_v44 }
  0xf6   : > { %v749_v22 = vadd.f32 %v956_v37, %v653_v12  ;;  %v765_v23 = vadd.f32 %v988_v38, %v669_v13  ;;  %v651_v55 = vadd.f32 %v1317_v56, %v612_v14  ;;  %v667_v57 = vadd.f32 %v1317_v56, %v628_v15  ;;  %v493_v62 = vpop.f32.mrf.mxu0  ;;  %v557_v63 = vpop.f32.mrf.mxu1 }
  0xf7   : > { %810 = vst [vmem:[%s1351_s27] sm:$0xff] %v778_v20  ;;  %826 = vst [vmem:[%s1351_s27 + $0x80] sm:$0xff] %v794_v21  ;;  %v656_v32 = vadd.f32 %v1317_v56, %v617_v34  ;;  %v672_v33 = vadd.f32 %v1317_v56, %v633_v35  ;;  %v615_v24 = vmul.f32 %v1298_v44, %v493_v62 }
  0xf8   : > { %v631_v37 = vmul.f32 %v1298_v44, %v557_v63  ;;  %v781_v25 = vmax.f32 %v749_v22, 0.0  ;;  %v797_v38 = vmax.f32 %v765_v23, 0.0  ;;  %v747_v4 = vadd.f32 %v952_v39, %v651_v55  ;;  %v1075_v10 = vpop.f32.mrf.mxu0  ;;  %v1091_v11 = vpop.f32.mrf.mxu1 }
  0xf9   : > { %v763_v5 = vadd.f32 %v984_v40, %v667_v57  ;;  %v752_v12 = vadd.f32 %v963_v45, %v656_v32  ;;  %v768_v13 = vadd.f32 %v995_v46, %v672_v33  ;;  %v654_v14 = vadd.f32 %v1317_v56, %v615_v24 }
  0xfa   : > { %v670_v15 = vadd.f32 %v1317_v56, %v631_v37  ;;  %813 = vst [vmem:[%s1351_s27 + $0x18] sm:$0xff] %v781_v25  ;;  %829 = vst [vmem:[%s1351_s27 + $0x98] sm:$0xff] %v797_v38  ;;  %v779_v26 = vmax.f32 %v747_v4, 0.0  ;;  %v618_v27 = vmul.f32 %v1075_v10, %v1298_v44  ;;  %v634_v40 = vmul.f32 %v1091_v11, %v1298_v44  ;;  %v496_v45 = vpop.f32.mrf.mxu0  ;;  %v560_v20 = vpop.f32.mrf.mxu1 }
  0xfb   : > { %v795_v39 = vmax.f32 %v763_v5, 0.0  ;;  %v784_v21 = vmax.f32 %v752_v12, 0.0  ;;  %v800_v34 = vmax.f32 %v768_v13, 0.0  ;;  %v750_v46 = vadd.f32 %v959_v47, %v654_v14 }
  0xfc   : > { %v766_v35 = vadd.f32 %v991_v48, %v670_v15  ;;  %811 = vst [vmem:[%s1351_s27 + $0x8] sm:$0xff] %v779_v26  ;;  %v657_v22 = vadd.f32 %v1317_v56, %v618_v27  ;;  %v673_v23 = vadd.f32 %v1317_v56, %v634_v40  ;;  %v616_v55 = vmul.f32 %v1298_v44, %v496_v45  ;;  %v1078_v62 = vpop.f32.mrf.mxu0  ;;  %v1094_v63 = vpop.f32.mrf.mxu1 }
  0xfd   : > { %827 = vst [vmem:[%s1351_s27 + $0x88] sm:$0xff] %v795_v39  ;;  %v632_v57 = vmul.f32 %v1298_v44, %v560_v20  ;;  %816 = vst [vmem:[%s1351_s27 + $0x30] sm:$0xff] %v784_v21  ;;  %v782_v47 = vmax.f32 %v750_v46, 0.0  ;;  %v621_v48 = vmul.f32 %v1078_v62, %v1298_v44  ;;  %v637_v33 = vmul.f32 %v1094_v63, %v1298_v44 }
  0xfe   : > { %832 = vst [vmem:[%s1351_s27 + $0xb0] sm:$0xff] %v800_v34  ;;  %v798_v32 = vmax.f32 %v766_v35, 0.0  ;;  %v753_v24 = vadd.f32 %v964_v49, %v657_v22  ;;  %v769_v37 = vadd.f32 %v996_v50, %v673_v23  ;;  %v655_v25 = vadd.f32 %v1317_v56, %v616_v55  ;;  %v509_v4 = vpop.f32.mrf.mxu0  ;;  %v573_v5 = vpop.f32.mrf.mxu1 }
  0xff   : > { %v671_v38 = vadd.f32 %v1317_v56, %v632_v57  ;;  %814 = vst [vmem:[%s1351_s27 + $0x20] sm:$0xff] %v782_v47  ;;  %v660_v10 = vadd.f32 %v1317_v56, %v621_v48  ;;  %v676_v11 = vadd.f32 %v1317_v56, %v637_v33  ;;  %v619_v28 = vmul.f32 %v1298_v44, %v509_v4 }
 0x100   : > { %830 = vst [vmem:[%s1351_s27 + $0xa0] sm:$0xff] %v798_v32  ;;  %v635_v49 = vmul.f32 %v1298_v44, %v573_v5  ;;  %v785_v29 = vmax.f32 %v753_v24, 0.0  ;;  %v801_v50 = vmax.f32 %v769_v37, 0.0  ;;  %v751_v12 = vadd.f32 %v960_v51, %v655_v25  ;;  %v1079_v14 = vpop.f32.mrf.mxu0  ;;  %v1095_v15 = vpop.f32.mrf.mxu1 }
 0x101   : > { %v767_v13 = vadd.f32 %v992_v52, %v671_v38  ;;  %v756_v26 = vadd.f32 %v971_v58, %v660_v10  ;;  %v772_v39 = vadd.f32 %v1003_v59, %v676_v11  ;;  %v658_v27 = vadd.f32 %v1317_v56, %v619_v28 }
 0x102   : > { %v674_v40 = vadd.f32 %v1317_v56, %v635_v49  ;;  %817 = vst [vmem:[%s1351_s27 + $0x38] sm:$0xff] %v785_v29  ;;  %833 = vst [vmem:[%s1351_s27 + $0xb8] sm:$0xff] %v801_v50  ;;  %v783_v30 = vmax.f32 %v751_v12, 0.0  ;;  %v622_v31 = vmul.f32 %v1079_v14, %v1298_v44  ;;  %v638_v52 = vmul.f32 %v1095_v15, %v1298_v44  ;;  %v512_v58 = vpop.f32.mrf.mxu0  ;;  %v576_v45 = vpop.f32.mrf.mxu1 }
 0x103   : > { %v799_v51 = vmax.f32 %v767_v13, 0.0  ;;  %v788_v20 = vmax.f32 %v756_v26, 0.0  ;;  %v804_v21 = vmax.f32 %v772_v39, 0.0  ;;  %v754_v59 = vadd.f32 %v967_v60, %v658_v27 }
 0x104   : > { %v770_v34 = vadd.f32 %v999_v61, %v674_v40  ;;  %815 = vst [vmem:[%s1351_s27 + $0x28] sm:$0xff] %v783_v30  ;;  %v661_v46 = vadd.f32 %v1317_v56, %v622_v31  ;;  %v677_v35 = vadd.f32 %v1317_v56, %v638_v52  ;;  %v620_v22 = vmul.f32 %v1298_v44, %v512_v58  ;;  %v1082_v55 = vpop.f32.mrf.mxu0  ;;  %v1098_v57 = vpop.f32.mrf.mxu1 }
 0x105   : > { %831 = vst [vmem:[%s1351_s27 + $0xa8] sm:$0xff] %v799_v51  ;;  %v636_v23 = vmul.f32 %v1298_v44, %v576_v45  ;;  %820 = vst [vmem:[%s1351_s27 + $0x50] sm:$0xff] %v788_v20  ;;  %v786_v60 = vmax.f32 %v754_v59, 0.0  ;;  %v625_v61 = vmul.f32 %v1082_v55, %v1298_v44  ;;  %v641_v63 = vmul.f32 %v1098_v57, %v1298_v44 }
 0x106   : > { %836 = vst [vmem:[%s1351_s27 + $0xd0] sm:$0xff] %v804_v21  ;;  %v802_v62 = vmax.f32 %v770_v34, 0.0  ;;  %v757_v47 = vadd.f32 %v972_v0, %v661_v46  ;;  %v773_v32 = vadd.f32 %v1004_v1, %v677_v35  ;;  %v659_v48 = vadd.f32 %v1317_v56, %v620_v22  ;;  %v525_v24 = vpop.f32.mrf.mxu0  ;;  %v589_v37 = vpop.f32.mrf.mxu1 }
 0x107   : > { %v675_v33 = vadd.f32 %v1317_v56, %v636_v23  ;;  %818 = vst [vmem:[%s1351_s27 + $0x40] sm:$0xff] %v786_v60  ;;  %v664_v25 = vadd.f32 %v1317_v56, %v625_v61  ;;  %v680_v38 = vadd.f32 %v1317_v56, %v641_v63  ;;  %v623_v36 = vmul.f32 %v1298_v44, %v525_v24 }
 0x108   : > { %834 = vst [vmem:[%s1351_s27 + $0xc0] sm:$0xff] %v802_v62  ;;  %v639_v0 = vmul.f32 %v1298_v44, %v589_v37  ;;  %v789_v41 = vmax.f32 %v757_v47, 0.0  ;;  %v805_v1 = vmax.f32 %v773_v32, 0.0  ;;  %v755_v4 = vadd.f32 %v968_v6, %v659_v48  ;;  %v1083_v10 = vpop.f32.mrf.mxu0  ;;  %v1099_v11 = vpop.f32.mrf.mxu1 }
 0x109   : > { %v771_v5 = vadd.f32 %v1000_v7, %v675_v33  ;;  %v760_v28 = vadd.f32 %v979_v8, %v664_v25  ;;  %v776_v49 = vadd.f32 %v1011_v9, %v680_v38  ;;  %v662_v29 = vadd.f32 %v1317_v56, %v623_v36 }
 0x10a   : > { %v678_v50 = vadd.f32 %v1317_v56, %v639_v0  ;;  %821 = vst [vmem:[%s1351_s27 + $0x58] sm:$0xff] %v789_v41  ;;  %837 = vst [vmem:[%s1351_s27 + $0xd8] sm:$0xff] %v805_v1  ;;  %v787_v42 = vmax.f32 %v755_v4, 0.0  ;;  %v626_v6 = vmul.f32 %v1083_v10, %v1298_v44  ;;  %v642_v7 = vmul.f32 %v1099_v11, %v1298_v44  ;;  %v528_v8 = vpop.f32.mrf.mxu0  ;;  %v592_v12 = vpop.f32.mrf.mxu1 }
 0x10b   : > { %v803_v43 = vmax.f32 %v771_v5, 0.0  ;;  %v792_v13 = vmax.f32 %v760_v28, 0.0  ;;  %v808_v14 = vmax.f32 %v776_v49, 0.0  ;;  %v758_v9 = vadd.f32 %v975_v16, %v662_v29 }
 0x10c   : > { %v774_v15 = vadd.f32 %v1007_v17, %v678_v50  ;;  %819 = vst [vmem:[%s1351_s27 + $0x48] sm:$0xff] %v787_v42  ;;  %v665_v26 = vadd.f32 %v1317_v56, %v626_v6  ;;  %v681_v39 = vadd.f32 %v1317_v56, %v642_v7  ;;  %v624_v27 = vmul.f32 %v1298_v44, %v528_v8 }
 0x10d   : > { %835 = vst [vmem:[%s1351_s27 + $0xc8] sm:$0xff] %v803_v43  ;;  %v640_v40 = vmul.f32 %v1298_v44, %v592_v12  ;;  %824 = vst [vmem:[%s1351_s27 + $0x70] sm:$0xff] %v792_v13  ;;  %v790_v16 = vmax.f32 %v758_v9, 0.0  ;;  %v1512_v45 = vunpack.c.h.bf16 %v1328_v2  ;;  %v1513_v21 = vunpack.c.h.bf16 %v1331_v3 }
 0x10e   : > { %840 = vst [vmem:[%s1351_s27 + $0xf0] sm:$0xff] %v808_v14  ;;  %v806_v30 = vmax.f32 %v774_v15, 0.0  ;;  %v761_v17 = vadd.f32 %v980_v18, %v665_v26  ;;  %v777_v51 = vadd.f32 %v1012_v19, %v681_v39  ;;  %v663_v31 = vadd.f32 %v1317_v56, %v624_v27 }
 0x10f   : > { %v679_v52 = vadd.f32 %v1317_v56, %v640_v40  ;;  %822 = vst [vmem:[%s1351_s27 + $0x60] sm:$0xff] %v790_v16 }
 0x110   : > { %838 = vst [vmem:[%s1351_s27 + $0xe0] sm:$0xff] %v806_v30  ;;  %v793_v44 = vmax.f32 %v761_v17, 0.0  ;;  %v809_v58 = vmax.f32 %v777_v51, 0.0  ;;  %v759_v20 = vadd.f32 %v1512_v45, %v663_v31 }
 0x111   : > { %v775_v59 = vadd.f32 %v1513_v21, %v679_v52 }
 0x112   : > { %825 = vst [vmem:[%s1351_s27 + $0x78] sm:$0xff] %v793_v44  ;;  %841 = vst [vmem:[%s1351_s27 + $0xf8] sm:$0xff] %v809_v58  ;;  %v791_v53 = vmax.f32 %v759_v20, 0.0 }
 0x113   : > { %v807_v18 = vmax.f32 %v775_v59, 0.0 }
 0x114   : > { %823 = vst [vmem:[%s1351_s27 + $0x68] sm:$0xff] %v791_v53 }
 0x115   : > { %839 = vst [vmem:[%s1351_s27 + $0xe8] sm:$0xff] %v807_v18 }
 0x116 PF: > { %s15_s18 = sadd.s32 1, %s1154_s18  }
 0x117   : > { %p12_p4 = scmp.ge.s32.totalorder %s15_s18, 4  }
 0x119   :  { %14 = sbr.rel (!%p12_p4) target bundleno = 1 (0x1), region = 73 }

</bundles_post_ra>
